<compile_context>
chip_gen: v7x
topology: tpu7x:2x2x1
jax: 0.10.0
libtpu: 0.0.40
codegen_flags: <defaults>
</compile_context>

<pallas_src>
import jax
import jax.numpy as jnp
from jax.experimental import pallas as pl
from jax.experimental.pallas import tpu as pltpu

DIM = 32
HEADS = 8
DIM_HEAD = DIM // HEADS
SCALE = DIM_HEAD ** -0.5
LN_EPS = 1e-5


def cross_attention_kernel(x_ref, ctx_ref, alibi_ref,
                           wq_ref, wkv_ref, wo_ref, bo_ref,
                           gamma_ref, beta_ref,
                           ef_ref, et_ref, rsel_ref, tsel_ref,
                           o_ref):
    # x_ref:     (Bt*N, D)        query rows for this batch block
    # ctx_ref:   (Bt*M, D)        context rows
    # alibi_ref: (Bt*N*M, H)      alibi in (b, i, j) row order, head in lanes
    # wq_ref:    (D, D)   = wq.T
    # wkv_ref:   (D, 2D)  = [wk.T | wv.T]
    # wo_ref:    (D, D)   = wo.T
    # ef_ref:    (D, H)   head-membership matrix with the attention scale folded in
    # et_ref:    (H, D)   head-membership matrix transposed (prob -> lane expansion)
    # rsel_ref:  (Bt*N*M, Bt*N)   row selector: row (b,i,j) <- q row (b,i)
    # tsel_ref:  (Bt*N*M, Bt*M)   row selector: row (b,i,j) <- k/v row (b,j)
    BN, D = x_ref.shape
    BNM, H = alibi_ref.shape
    M = BNM // BN

    gamma = gamma_ref[...]          # (1, D)
    beta = beta_ref[...]            # (1, D)

    def layernorm(t):               # t: (rows, D)
        mu = jnp.mean(t, axis=-1, keepdims=True)
        var = jnp.mean((t - mu) ** 2, axis=-1, keepdims=True)
        return (t - mu) * jax.lax.rsqrt(var + LN_EPS) * gamma + beta

    xn = layernorm(x_ref[...].astype(jnp.float32))      # (BN, D)
    cn = layernorm(ctx_ref[...].astype(jnp.float32))    # (BM, D)

    # Pre-transposed projections (PyTorch nn.Linear: y = x @ W.T done wrapper-side);
    # K and V are fused into one (D, 2D) weight.
    q = jnp.dot(xn, wq_ref[...], preferred_element_type=jnp.float32)    # (BN, D)
    kv = jnp.dot(cn, wkv_ref[...], preferred_element_type=jnp.float32)  # (BM, 2D)

    # Replicate rows into (b, i, j) order with constant selector matmuls (MXU),
    # avoiding any sublane relayout / repeat / per-head slicing.
    q_rep = jnp.dot(rsel_ref[...], q, preferred_element_type=jnp.float32)    # (BNM, D)
    kv_rep = jnp.dot(tsel_ref[...], kv, preferred_element_type=jnp.float32)  # (BNM, 2D)
    k_rep = kv_rep[:, :D]
    v_rep = kv_rep[:, D:]

    # Per-head attention scores for every (b, i, j) row at once:
    # s[r, h] = scale * sum_{d in head h} q[r, d] * k[r, d]
    s = jnp.dot(q_rep * k_rep, ef_ref[...],
                preferred_element_type=jnp.float32) + alibi_ref[...]     # (BNM, H)

    # Softmax over the context axis j (groups of M consecutive rows), all heads
    # at once via batched sublane reductions.
    s3 = s.reshape(BN, M, H)
    m = jnp.max(s3, axis=1, keepdims=True)               # (BN, 1, H)
    p3 = jnp.exp(s3 - m)
    denom = jnp.sum(p3, axis=1, keepdims=True)           # (BN, 1, H)
    p3 = p3 * pl.reciprocal(denom, approx=True)

    # Expand the per-head probabilities back onto the (h d) lane layout and
    # contract with V over the context axis.
    pe = jnp.dot(p3.reshape(BNM, H), et_ref[...],
                 preferred_element_type=jnp.float32)      # (BNM, D)
    out = jnp.sum((pe * v_rep).reshape(BN, M, D), axis=1)  # (BN, D)

    # Output projection (to_out).
    y = jnp.dot(out, wo_ref[...], preferred_element_type=jnp.float32) + bo_ref[...]
    o_ref[...] = y.astype(o_ref.dtype)


def cross_attention(x, context, alibi, params, *, batch_block=None):
    B, N, D = x.shape
    M = context.shape[1]
    H = alibi.shape[1]
    dh = D // H
    scale = dh ** -0.5

    # Largest divisor of B (capped at 8) -> batch elements per grid step.
    # For the toy B=2 case the grid collapses to a single step; for larger B
    # multiple "parallel" steps remain available for megacore sharding.
    if batch_block is None:
        batch_block = 1
        for cand in range(min(B, 8), 0, -1):
            if B % cand == 0:
                batch_block = cand
                break
    Bt = batch_block
    assert B % Bt == 0, "batch_block must divide the batch size"
    num_blocks = B // Bt
    bn, bm, bnm = Bt * N, Bt * M, Bt * N * M

    f32 = jnp.float32
    # Pre-transposed / fused weights (all free XLA-side work).
    wq_t = params["wq"].T.astype(f32)                                           # (D, D)
    wkv_t = jnp.concatenate([params["wk"].T, params["wv"].T], axis=1).astype(f32)  # (D, 2D)
    wo_t = params["wo"].T.astype(f32)                                           # (D, D)
    bo = params["bo"].reshape(1, D).astype(f32)
    gamma = params["gamma"].reshape(1, D).astype(f32)
    beta = params["beta"].reshape(1, D).astype(f32)

    # Head-membership matrices: lane d belongs to head d // dh.
    lane_head = jnp.arange(D, dtype=jnp.int32) // dh
    e = (lane_head[:, None] == jnp.arange(H, dtype=jnp.int32)[None, :]).astype(f32)  # (D, H)
    e_fwd = e * scale          # attention scale folded into the score contraction
    e_bwd = e.T                # (H, D)

    # Constant row-replication selectors producing (b, i, j)-ordered rows.
    r_idx = jnp.arange(bnm, dtype=jnp.int32)
    rb = r_idx // (N * M)
    ri = (r_idx // M) % N
    rj = r_idx % M
    r_sel = ((rb * N + ri)[:, None] ==
             jnp.arange(bn, dtype=jnp.int32)[None, :]).astype(f32)   # (bnm, bn)
    t_sel = ((rb * M + rj)[:, None] ==
             jnp.arange(bm, dtype=jnp.int32)[None, :]).astype(f32)   # (bnm, bm)

    # Flattened, batch-block friendly views (XLA-side reshape/transpose).
    x2 = x.reshape(B * N, D)
    c2 = context.reshape(B * M, D)
    alibi2 = alibi.transpose(0, 2, 3, 1).reshape(B * N * M, H)

    grid_spec = pltpu.PrefetchScalarGridSpec(
        num_scalar_prefetch=0,
        grid=(num_blocks,),
        in_specs=[
            pl.BlockSpec((bn, D), lambda b: (b, 0)),      # x rows
            pl.BlockSpec((bm, D), lambda b: (b, 0)),      # context rows
            pl.BlockSpec((bnm, H), lambda b: (b, 0)),     # alibi rows
            pl.BlockSpec((D, D), lambda b: (0, 0)),       # wq.T
            pl.BlockSpec((D, 2 * D), lambda b: (0, 0)),   # [wk.T | wv.T]
            pl.BlockSpec((D, D), lambda b: (0, 0)),       # wo.T
            pl.BlockSpec((1, D), lambda b: (0, 0)),       # bo
            pl.BlockSpec((1, D), lambda b: (0, 0)),       # ln gamma
            pl.BlockSpec((1, D), lambda b: (0, 0)),       # ln beta
            pl.BlockSpec((D, H), lambda b: (0, 0)),       # e_fwd
            pl.BlockSpec((H, D), lambda b: (0, 0)),       # e_bwd
            pl.BlockSpec((bnm, bn), lambda b: (0, 0)),    # r_sel
            pl.BlockSpec((bnm, bm), lambda b: (0, 0)),    # t_sel
        ],
        out_specs=pl.BlockSpec((bn, D), lambda b: (b, 0)),
    )
    out2 = pl.pallas_call(
        cross_attention_kernel,
        out_shape=jax.ShapeDtypeStruct((B * N, D), x.dtype),
        grid_spec=grid_spec,
        compiler_params=pltpu.CompilerParams(
            dimension_semantics=("parallel",)),
    )(x2, c2, alibi2, wq_t, wkv_t, wo_t, bo, gamma, beta,
      e_fwd, e_bwd, r_sel, t_sel)
    return out2.reshape(B, N, D)


def cross_attention_ref(x, context, alibi, params, heads=HEADS):
    """Pure-JAX reference mirroring the PyTorch forward."""
    def ln(t):
        mu = t.mean(-1, keepdims=True)
        var = ((t - mu) ** 2).mean(-1, keepdims=True)
        return (t - mu) / jnp.sqrt(var + LN_EPS) * params["gamma"] + params["beta"]

    B, N, D = x.shape
    dh = D // heads
    xn, cn = ln(x), ln(context)
    q = xn @ params["wq"].T
    k = cn @ params["wk"].T
    v = cn @ params["wv"].T

    def split(t):
        b, n, _ = t.shape
        return t.reshape(b, n, heads, dh).transpose(0, 2, 1, 3)

    q, k, v = split(q), split(k), split(v)
    s = jnp.einsum("bhid,bhjd->bhij", q, k) * (dh ** -0.5) + alibi
    p = jax.nn.softmax(s, axis=-1)
    o = jnp.einsum("bhij,bhjd->bhid", p, v)
    o = o.transpose(0, 2, 1, 3).reshape(B, N, D)
    return o @ params["wo"].T + params["bo"][0]


def init_params(key, dim=DIM):
    ks = jax.random.split(key, 5)
    bound = 1.0 / jnp.sqrt(dim)
    return {
        "wq": jax.random.uniform(ks[0], (dim, dim), jnp.float32, -bound, bound),
        "wk": jax.random.uniform(ks[1], (dim, dim), jnp.float32, -bound, bound),
        "wv": jax.random.uniform(ks[2], (dim, dim), jnp.float32, -bound, bound),
        "wo": jax.random.uniform(ks[3], (dim, dim), jnp.float32, -bound, bound),
        "bo": jax.random.uniform(ks[4], (1, dim), jnp.float32, -bound, bound),
        "gamma": jnp.ones((1, dim), jnp.float32),   # nn.LayerNorm defaults
        "beta": jnp.zeros((1, dim), jnp.float32),
    }


if __name__ == "__main__":
    B, N, M = 2, 8, 8
    key = jax.random.PRNGKey(0)
    kx, kc, ka, kp = jax.random.split(key, 4)

    x = jax.random.normal(kx, (B, N, DIM), jnp.float32)
    context = jax.random.normal(kc, (B, M, DIM), jnp.float32)
    alibi = 0.1 * jax.random.normal(ka, (B, HEADS, N, M), jnp.float32)
    params = init_params(kp)

    out = jax.block_until_ready(cross_attention(x, context, alibi, params))
    ref = cross_attention_ref(x, context, alibi, params)

    assert out.shape == (B, N, DIM)
    # Tolerance re-baselined for the approximate (EUP) softmax reciprocal.
    assert jnp.allclose(out, ref, atol=1e-2, rtol=1e-2), \
        f"max err {jnp.max(jnp.abs(out - ref))}"
    print("KERNEL_OK")
</pallas_src>

<mosaic_0001>
module attributes {stable_mosaic.version = 11 : i64} {
  func.func @cross_attention_kernel(%arg0: i32, %arg1: memref<16x32xf32, #tpu.memory_space<vmem>>, %arg2: memref<16x32xf32, #tpu.memory_space<vmem>>, %arg3: memref<128x8xf32, #tpu.memory_space<vmem>>, %arg4: memref<32x32xf32, #tpu.memory_space<vmem>>, %arg5: memref<32x64xf32, #tpu.memory_space<vmem>>, %arg6: memref<32x32xf32, #tpu.memory_space<vmem>>, %arg7: memref<1x32xf32, #tpu.memory_space<vmem>>, %arg8: memref<1x32xf32, #tpu.memory_space<vmem>>, %arg9: memref<1x32xf32, #tpu.memory_space<vmem>>, %arg10: memref<32x8xf32, #tpu.memory_space<vmem>>, %arg11: memref<8x32xf32, #tpu.memory_space<vmem>>, %arg12: memref<128x16xf32, #tpu.memory_space<vmem>>, %arg13: memref<128x16xf32, #tpu.memory_space<vmem>>, %arg14: memref<16x32xf32, #tpu.memory_space<vmem>>) attributes {dimension_semantics = [#tpu.dimension_semantics<parallel>], iteration_bounds = array<i64: 1>, scalar_prefetch = 0 : i64, scratch_operands = 0 : i64, tpu.core_type = #tpu.core_type<tc>, window_params = [{transform_indices = @transform_0, window_bounds = array<i64: 16, 32>}, {transform_indices = @transform_1, window_bounds = array<i64: 16, 32>}, {transform_indices = @transform_2, window_bounds = array<i64: 128, 8>}, {pipeline_mode = #tpu.pipeline_mode<synchronous>, transform_indices = @transform_3, window_bounds = array<i64: 32, 32>}, {pipeline_mode = #tpu.pipeline_mode<synchronous>, transform_indices = @transform_4, window_bounds = array<i64: 32, 64>}, {pipeline_mode = #tpu.pipeline_mode<synchronous>, transform_indices = @transform_5, window_bounds = array<i64: 32, 32>}, {pipeline_mode = #tpu.pipeline_mode<synchronous>, transform_indices = @transform_6, window_bounds = array<i64: 1, 32>}, {pipeline_mode = #tpu.pipeline_mode<synchronous>, transform_indices = @transform_7, window_bounds = array<i64: 1, 32>}, {pipeline_mode = #tpu.pipeline_mode<synchronous>, transform_indices = @transform_8, window_bounds = array<i64: 1, 32>}, {pipeline_mode = #tpu.pipeline_mode<synchronous>, transform_indices = @transform_9, window_bounds = array<i64: 32, 8>}, {pipeline_mode = #tpu.pipeline_mode<synchronous>, transform_indices = @transform_10, window_bounds = array<i64: 8, 32>}, {pipeline_mode = #tpu.pipeline_mode<synchronous>, transform_indices = @transform_11, window_bounds = array<i64: 128, 16>}, {pipeline_mode = #tpu.pipeline_mode<synchronous>, transform_indices = @transform_12, window_bounds = array<i64: 128, 16>}, {transform_indices = @transform_13, window_bounds = array<i64: 16, 32>}]} {
    %c0 = arith.constant 0 : index
    %c0_0 = arith.constant 0 : index
    %0 = vector.load %arg8[%c0, %c0_0] : memref<1x32xf32, #tpu.memory_space<vmem>>, vector<1x32xf32>
    %c0_1 = arith.constant 0 : index
    %c0_2 = arith.constant 0 : index
    %1 = vector.load %arg9[%c0_1, %c0_2] : memref<1x32xf32, #tpu.memory_space<vmem>>, vector<1x32xf32>
    %c0_3 = arith.constant 0 : index
    %c0_4 = arith.constant 0 : index
    %2 = vector.load %arg1[%c0_3, %c0_4] : memref<16x32xf32, #tpu.memory_space<vmem>>, vector<16x32xf32>
    %cst = arith.constant dense<0.000000e+00> : vector<16xf32>
    %3 = vector.multi_reduction <add>, %2, %cst [1] : vector<16x32xf32> to vector<16xf32>
    %4 = vector.shape_cast %3 : vector<16xf32> to vector<16x1xf32>
    %cst_5 = arith.constant 3.200000e+01 : f32
    %5 = vector.broadcast %cst_5 : f32 to vector<16x1xf32>
    %6 = arith.divf %4, %5 : vector<16x1xf32>
    %7 = vector.broadcast %6 : vector<16x1xf32> to vector<16x32xf32>
    %8 = arith.subf %2, %7 : vector<16x32xf32>
    %9 = arith.mulf %8, %8 : vector<16x32xf32>
    %cst_6 = arith.constant dense<0.000000e+00> : vector<16xf32>
    %10 = vector.multi_reduction <add>, %9, %cst_6 [1] : vector<16x32xf32> to vector<16xf32>
    %11 = vector.shape_cast %10 : vector<16xf32> to vector<16x1xf32>
    %cst_7 = arith.constant 3.200000e+01 : f32
    %12 = vector.broadcast %cst_7 : f32 to vector<16x1xf32>
    %13 = arith.divf %11, %12 : vector<16x1xf32>
    %14 = vector.broadcast %6 : vector<16x1xf32> to vector<16x32xf32>
    %15 = arith.subf %2, %14 : vector<16x32xf32>
    %cst_8 = arith.constant 9.99999974E-6 : f32
    %16 = vector.broadcast %cst_8 : f32 to vector<16x1xf32>
    %17 = arith.addf %13, %16 : vector<16x1xf32>
    %18 = math.rsqrt %17 : vector<16x1xf32>
    %19 = vector.broadcast %18 : vector<16x1xf32> to vector<16x32xf32>
    %20 = arith.mulf %15, %19 : vector<16x32xf32>
    %21 = vector.broadcast %0 : vector<1x32xf32> to vector<16x32xf32>
    %22 = arith.mulf %20, %21 : vector<16x32xf32>
    %23 = vector.broadcast %1 : vector<1x32xf32> to vector<16x32xf32>
    %24 = arith.addf %22, %23 : vector<16x32xf32>
    %c0_9 = arith.constant 0 : index
    %c0_10 = arith.constant 0 : index
    %25 = vector.load %arg2[%c0_9, %c0_10] : memref<16x32xf32, #tpu.memory_space<vmem>>, vector<16x32xf32>
    %cst_11 = arith.constant dense<0.000000e+00> : vector<16xf32>
    %26 = vector.multi_reduction <add>, %25, %cst_11 [1] : vector<16x32xf32> to vector<16xf32>
    %27 = vector.shape_cast %26 : vector<16xf32> to vector<16x1xf32>
    %cst_12 = arith.constant 3.200000e+01 : f32
    %28 = vector.broadcast %cst_12 : f32 to vector<16x1xf32>
    %29 = arith.divf %27, %28 : vector<16x1xf32>
    %30 = vector.broadcast %29 : vector<16x1xf32> to vector<16x32xf32>
    %31 = arith.subf %25, %30 : vector<16x32xf32>
    %32 = arith.mulf %31, %31 : vector<16x32xf32>
    %cst_13 = arith.constant dense<0.000000e+00> : vector<16xf32>
    %33 = vector.multi_reduction <add>, %32, %cst_13 [1] : vector<16x32xf32> to vector<16xf32>
    %34 = vector.shape_cast %33 : vector<16xf32> to vector<16x1xf32>
    %cst_14 = arith.constant 3.200000e+01 : f32
    %35 = vector.broadcast %cst_14 : f32 to vector<16x1xf32>
    %36 = arith.divf %34, %35 : vector<16x1xf32>
    %37 = vector.broadcast %29 : vector<16x1xf32> to vector<16x32xf32>
    %38 = arith.subf %25, %37 : vector<16x32xf32>
    %cst_15 = arith.constant 9.99999974E-6 : f32
    %39 = vector.broadcast %cst_15 : f32 to vector<16x1xf32>
    %40 = arith.addf %36, %39 : vector<16x1xf32>
    %41 = math.rsqrt %40 : vector<16x1xf32>
    %42 = vector.broadcast %41 : vector<16x1xf32> to vector<16x32xf32>
    %43 = arith.mulf %38, %42 : vector<16x32xf32>
    %44 = vector.broadcast %0 : vector<1x32xf32> to vector<16x32xf32>
    %45 = arith.mulf %43, %44 : vector<16x32xf32>
    %46 = vector.broadcast %1 : vector<1x32xf32> to vector<16x32xf32>
    %47 = arith.addf %45, %46 : vector<16x32xf32>
    %c0_16 = arith.constant 0 : index
    %c0_17 = arith.constant 0 : index
    %48 = vector.load %arg4[%c0_16, %c0_17] : memref<32x32xf32, #tpu.memory_space<vmem>>, vector<32x32xf32>
    %cst_18 = arith.constant dense<0.000000e+00> : vector<16x32xf32>
    %49 = tpu.matmul %24, %48, %cst_18 {dimension_numbers = #tpu.dot_dimension_numbers<[1], [0], [0], [1], [0, 0, 1, 1], [], []>} : vector<16x32xf32>, vector<32x32xf32>, vector<16x32xf32> -> vector<16x32xf32>
    %c0_19 = arith.constant 0 : index
    %c0_20 = arith.constant 0 : index
    %50 = vector.load %arg5[%c0_19, %c0_20] : memref<32x64xf32, #tpu.memory_space<vmem>>, vector<32x64xf32>
    %cst_21 = arith.constant dense<0.000000e+00> : vector<16x64xf32>
    %51 = tpu.matmul %47, %50, %cst_21 {dimension_numbers = #tpu.dot_dimension_numbers<[1], [0], [0], [1], [0, 0, 1, 1], [], []>} : vector<16x32xf32>, vector<32x64xf32>, vector<16x64xf32> -> vector<16x64xf32>
    %c0_22 = arith.constant 0 : index
    %c0_23 = arith.constant 0 : index
    %52 = vector.load %arg12[%c0_22, %c0_23] : memref<128x16xf32, #tpu.memory_space<vmem>>, vector<128x16xf32>
    %cst_24 = arith.constant dense<0.000000e+00> : vector<128x32xf32>
    %53 = tpu.matmul %52, %49, %cst_24 {dimension_numbers = #tpu.dot_dimension_numbers<[1], [0], [0], [1], [0, 0, 1, 1], [], []>} : vector<128x16xf32>, vector<16x32xf32>, vector<128x32xf32> -> vector<128x32xf32>
    %c0_25 = arith.constant 0 : index
    %c0_26 = arith.constant 0 : index
    %54 = vector.load %arg13[%c0_25, %c0_26] : memref<128x16xf32, #tpu.memory_space<vmem>>, vector<128x16xf32>
    %cst_27 = arith.constant dense<0.000000e+00> : vector<128x64xf32>
    %55 = tpu.matmul %54, %51, %cst_27 {dimension_numbers = #tpu.dot_dimension_numbers<[1], [0], [0], [1], [0, 0, 1, 1], [], []>} : vector<128x16xf32>, vector<16x64xf32>, vector<128x64xf32> -> vector<128x64xf32>
    %56 = vector.extract_strided_slice %55 {offsets = [0, 0], sizes = [128, 32], strides = [1, 1]} : vector<128x64xf32> to vector<128x32xf32>
    %57 = vector.extract_strided_slice %55 {offsets = [0, 32], sizes = [128, 32], strides = [1, 1]} : vector<128x64xf32> to vector<128x32xf32>
    %58 = arith.mulf %53, %56 : vector<128x32xf32>
    %c0_28 = arith.constant 0 : index
    %c0_29 = arith.constant 0 : index
    %59 = vector.load %arg10[%c0_28, %c0_29] : memref<32x8xf32, #tpu.memory_space<vmem>>, vector<32x8xf32>
    %cst_30 = arith.constant dense<0.000000e+00> : vector<128x8xf32>
    %60 = tpu.matmul %58, %59, %cst_30 {dimension_numbers = #tpu.dot_dimension_numbers<[1], [0], [0], [1], [0, 0, 1, 1], [], []>} : vector<128x32xf32>, vector<32x8xf32>, vector<128x8xf32> -> vector<128x8xf32>
    %c0_31 = arith.constant 0 : index
    %c0_32 = arith.constant 0 : index
    %61 = vector.load %arg3[%c0_31, %c0_32] : memref<128x8xf32, #tpu.memory_space<vmem>>, vector<128x8xf32>
    %62 = arith.addf %60, %61 : vector<128x8xf32>
    %63 = vector.shape_cast %62 : vector<128x8xf32> to vector<16x8x8xf32>
    %cst_33 = arith.constant dense<0xFF800000> : vector<16x8xf32>
    %64 = vector.multi_reduction <maximumf>, %63, %cst_33 [1] : vector<16x8x8xf32> to vector<16x8xf32>
    %65 = vector.shape_cast %64 : vector<16x8xf32> to vector<16x1x8xf32>
    %66 = vector.broadcast %65 : vector<16x1x8xf32> to vector<16x8x8xf32>
    %67 = arith.subf %63, %66 : vector<16x8x8xf32>
    %68 = math.exp %67 : vector<16x8x8xf32>
    %cst_34 = arith.constant dense<0.000000e+00> : vector<16x8xf32>
    %69 = vector.multi_reduction <add>, %68, %cst_34 [1] : vector<16x8x8xf32> to vector<16x8xf32>
    %70 = vector.shape_cast %69 : vector<16x8xf32> to vector<16x1x8xf32>
    %71 = tpu.reciprocal %70 {approx = true} : vector<16x1x8xf32> -> vector<16x1x8xf32>
    %72 = vector.broadcast %71 : vector<16x1x8xf32> to vector<16x8x8xf32>
    %73 = arith.mulf %68, %72 : vector<16x8x8xf32>
    %74 = vector.shape_cast %73 : vector<16x8x8xf32> to vector<128x8xf32>
    %c0_35 = arith.constant 0 : index
    %c0_36 = arith.constant 0 : index
    %75 = vector.load %arg11[%c0_35, %c0_36] : memref<8x32xf32, #tpu.memory_space<vmem>>, vector<8x32xf32>
    %cst_37 = arith.constant dense<0.000000e+00> : vector<128x32xf32>
    %76 = tpu.matmul %74, %75, %cst_37 {dimension_numbers = #tpu.dot_dimension_numbers<[1], [0], [0], [1], [0, 0, 1, 1], [], []>} : vector<128x8xf32>, vector<8x32xf32>, vector<128x32xf32> -> vector<128x32xf32>
    %77 = arith.mulf %76, %57 : vector<128x32xf32>
    %78 = vector.shape_cast %77 : vector<128x32xf32> to vector<16x8x32xf32>
    %cst_38 = arith.constant dense<0.000000e+00> : vector<16x32xf32>
    %79 = vector.multi_reduction <add>, %78, %cst_38 [1] : vector<16x8x32xf32> to vector<16x32xf32>
    %c0_39 = arith.constant 0 : index
    %c0_40 = arith.constant 0 : index
    %80 = vector.load %arg6[%c0_39, %c0_40] : memref<32x32xf32, #tpu.memory_space<vmem>>, vector<32x32xf32>
    %cst_41 = arith.constant dense<0.000000e+00> : vector<16x32xf32>
    %81 = tpu.matmul %79, %80, %cst_41 {dimension_numbers = #tpu.dot_dimension_numbers<[1], [0], [0], [1], [0, 0, 1, 1], [], []>} : vector<16x32xf32>, vector<32x32xf32>, vector<16x32xf32> -> vector<16x32xf32>
    %c0_42 = arith.constant 0 : index
    %c0_43 = arith.constant 0 : index
    %82 = vector.load %arg7[%c0_42, %c0_43] : memref<1x32xf32, #tpu.memory_space<vmem>>, vector<1x32xf32>
    %83 = vector.broadcast %82 : vector<1x32xf32> to vector<16x32xf32>
    %84 = arith.addf %81, %83 : vector<16x32xf32>
    %c0_44 = arith.constant 0 : index
    %c0_45 = arith.constant 0 : index
    %85 = vector.load %arg14[%c0_44, %c0_45] : memref<16x32xf32, #tpu.memory_space<vmem>>, vector<16x32xf32>
    tpu.vector_store %arg14[%c0_44, %c0_45], %84 {strides = array<i32>} : memref<16x32xf32, #tpu.memory_space<vmem>>, vector<16x32xf32>,
    return
  }
  func.func @transform_0(%arg0: i32) -> (i32, i32) {
    %c0_i32 = arith.constant 0 : i32
    %c0_i32_0 = arith.constant 0 : i32
    return %arg0, %c0_i32 : i32, i32
  }
  func.func @transform_1(%arg0: i32) -> (i32, i32) {
    %c0_i32 = arith.constant 0 : i32
    %c0_i32_0 = arith.constant 0 : i32
    return %arg0, %c0_i32 : i32, i32
  }
  func.func @transform_2(%arg0: i32) -> (i32, i32) {
    %c0_i32 = arith.constant 0 : i32
    %c0_i32_0 = arith.constant 0 : i32
    return %arg0, %c0_i32 : i32, i32
  }
  func.func @transform_3(%arg0: i32) -> (i32, i32) {
    %c0_i32 = arith.constant 0 : i32
    %c0_i32_0 = arith.constant 0 : i32
    %c0_i32_1 = arith.constant 0 : i32
    return %c0_i32, %c0_i32_0 : i32, i32
  }
  func.func @transform_4(%arg0: i32) -> (i32, i32) {
    %c0_i32 = arith.constant 0 : i32
    %c0_i32_0 = arith.constant 0 : i32
    %c0_i32_1 = arith.constant 0 : i32
    return %c0_i32, %c0_i32_0 : i32, i32
  }
  func.func @transform_5(%arg0: i32) -> (i32, i32) {
    %c0_i32 = arith.constant 0 : i32
    %c0_i32_0 = arith.constant 0 : i32
    %c0_i32_1 = arith.constant 0 : i32
    return %c0_i32, %c0_i32_0 : i32, i32
  }
  func.func @transform_6(%arg0: i32) -> (i32, i32) {
    %c0_i32 = arith.constant 0 : i32
    %c0_i32_0 = arith.constant 0 : i32
    %c0_i32_1 = arith.constant 0 : i32
    return %c0_i32, %c0_i32_0 : i32, i32
  }
  func.func @transform_7(%arg0: i32) -> (i32, i32) {
    %c0_i32 = arith.constant 0 : i32
    %c0_i32_0 = arith.constant 0 : i32
    %c0_i32_1 = arith.constant 0 : i32
    return %c0_i32, %c0_i32_0 : i32, i32
  }
  func.func @transform_8(%arg0: i32) -> (i32, i32) {
    %c0_i32 = arith.constant 0 : i32
    %c0_i32_0 = arith.constant 0 : i32
    %c0_i32_1 = arith.constant 0 : i32
    return %c0_i32, %c0_i32_0 : i32, i32
  }
  func.func @transform_9(%arg0: i32) -> (i32, i32) {
    %c0_i32 = arith.constant 0 : i32
    %c0_i32_0 = arith.constant 0 : i32
    %c0_i32_1 = arith.constant 0 : i32
    return %c0_i32, %c0_i32_0 : i32, i32
  }
  func.func @transform_10(%arg0: i32) -> (i32, i32) {
    %c0_i32 = arith.constant 0 : i32
    %c0_i32_0 = arith.constant 0 : i32
    %c0_i32_1 = arith.constant 0 : i32
    return %c0_i32, %c0_i32_0 : i32, i32
  }
  func.func @transform_11(%arg0: i32) -> (i32, i32) {
    %c0_i32 = arith.constant 0 : i32
    %c0_i32_0 = arith.constant 0 : i32
    %c0_i32_1 = arith.constant 0 : i32
    return %c0_i32, %c0_i32_0 : i32, i32
  }
  func.func @transform_12(%arg0: i32) -> (i32, i32) {
    %c0_i32 = arith.constant 0 : i32
    %c0_i32_0 = arith.constant 0 : i32
    %c0_i32_1 = arith.constant 0 : i32
    return %c0_i32, %c0_i32_0 : i32, i32
  }
  func.func @transform_13(%arg0: i32) -> (i32, i32) {
    %c0_i32 = arith.constant 0 : i32
    %c0_i32_0 = arith.constant 0 : i32
    return %arg0, %c0_i32 : i32, i32
  }
}

</mosaic_0001>

<bundles_post_ra>
// kernel: tpu_custom_call.1
= control target key start
LH: loop header
LB: loop body
LE: loop exit
PB: predicated region body
PF: predicated region fallthrough
CT: control target
= control target key end

     0   :  { %vm49_vm0 = vcmask 261120   ;;  %s2854_s0 = inlined_call_operand.vmem [shape: f32[16,32], index: 0, kind: input, shape index: {}]   ;;  %s2855_s1 = inlined_call_operand.vmem [shape: f32[16,32], index: 1, kind: input, shape index: {}]   ;;  %s2856_s2 = inlined_call_operand.vmem [shape: f32[128,8], index: 2, kind: input, shape index: {}]   ;;  %s2857_s3 = inlined_call_operand.vmem [shape: f32[32,32], index: 3, kind: input, shape index: {}]   ;;  %s2858_s4 = inlined_call_operand.vmem [shape: f32[32,64], index: 4, kind: input, shape index: {}]   ;;  %s2859_s5 = inlined_call_operand.vmem [shape: f32[32,32], index: 5, kind: input, shape index: {}]   ;;  %s2860_s6 = inlined_call_operand.vmem [shape: f32[1,32], index: 6, kind: input, shape index: {}]   ;;  %s2861_s7 = inlined_call_operand.vmem [shape: f32[1,32], index: 7, kind: input, shape index: {}]   ;;  %s2862_s8 = inlined_call_operand.vmem [shape: f32[1,32], index: 8, kind: input, shape index: {}]   ;;  %s2863_s9 = inlined_call_operand.vmem [shape: f32[32,8], index: 9, kind: input, shape index: {}]   ;;  %s2864_s10 = inlined_call_operand.vmem [shape: f32[8,32], index: 10, kind: input, shape index: {}]   ;;  %s2865_s11 = inlined_call_operand.vmem [shape: f32[128,16], index: 11, kind: input, shape index: {}]   ;;  %s2866_s12 = inlined_call_operand.vmem [shape: f32[128,16], index: 12, kind: input, shape index: {}]   ;;  %s2867_s13 = inlined_call_operand.hbm [shape: f32[16,32], index: 13, kind: output, shape index: {}]  }
   0x1   :  { %v47_v0 = vld [vmem:[%s2854_s0] sm:$0xff]  ;;  %v48_v1 = vld [vmem:[%s2854_s0 + $0x8] sm:$0xff] }
   0x2   :  { %v93_v2 = vld [vmem:[%s2855_s1] sm:$0xff]  ;;  %v50_v3 = vsel %vm49_vm0, %v47_v0, 0.0  ;;  %v53_v4 = vsel %vm49_vm0, %v48_v1, 0.0  ;;  %v94_v5 = vld [vmem:[%s2855_s1 + $0x8] sm:$0xff] }
   0x3   :  { %18 = vsyncpa [#allocation3], 0  ;;  %51 = vadd.xlane.f32.xlu0 %v50_v3  ;;  %54 = vadd.xlane.f32.xlu1 %v53_v4  ;;  %v95_v6 = vsel %vm49_vm0, %v93_v2, 0.0  ;;  %v98_v7 = vsel %vm49_vm0, %v94_v5, 0.0  ;;  %v125_v28 = vld [vmem:[%s2857_s3] sm:$0xff]  ;;  %v126_v29 = vld [vmem:[%s2857_s3 + $0x8] sm:$0xff] }
   0x4   :  { %v127_v30 = vld [vmem:[%s2857_s3 + $0x10] sm:$0xff]  ;;  %v2090_v31 = vpack.c.bf16 %v126_v29, %v125_v28  ;;  %v128_v32 = vld [vmem:[%s2857_s3 + $0x18] sm:$0xff]  ;;  %v210_v34 = vld [vmem:[%s2858_s4] sm:$0xff]  ;;  %vm311_vm1 = vcmask 130048   ;;  %vm943_vm2 = vcmask 64512   ;;  %vm1661_vm3 = vcmask 1041409  }
   0x5   :  { %v2094_v33 = vpack.c.bf16 %v128_v32, %v127_v30  ;;  %v211_v35 = vld [vmem:[%s2858_s4 + $0x8] sm:$0xff]  ;;  %v212_v37 = vld [vmem:[%s2858_s4 + $0x10] sm:$0xff]  ;;  %v213_v38 = vld [vmem:[%s2858_s4 + $0x18] sm:$0xff]  ;;  %vm1663_vm4 = vcmask 1042434   ;;  %vm1665_vm5 = vcmask 1043459   ;;  %vm1667_vm6 = vcmask 1044484  }
   0x6   :  { %2091 = vmatprep.subr.bf16.mxu0 %v2090_v31  ;;  %v2098_v36 = vpack.c.bf16 %v211_v35, %v210_v34  ;;  %v2102_v39 = vpack.c.bf16 %v213_v38, %v212_v37  ;;  %v1779_v53 = vld [vmem:[%s2861_s7] ss:$0 sm:$0xff]  ;;  %v300_v28 = vld [vmem:[%s2865_s11 + $0x28] sm:$0xff]  ;;  %v301_v29 = vld [vmem:[%s2865_s11 + $0x30] sm:$0xff]  ;;  %s2230_s7 = smov 96   ;;  %vm1669_vm7 = vcmask 1045509  }
   0x7   :  { %96 = vadd.xlane.f32.xlu0 %v95_v6  ;;  %99 = vadd.xlane.f32.xlu1 %v98_v7  ;;  %v1780_v55 = vld [vmem:[%s2862_s8] ss:$0 sm:$0xff]  ;;  %v510_v30 = vld [vmem:[%s2866_s12 + $0x28] sm:$0xff]  ;;  %v302_v32 = vld [vmem:[%s2865_s11 + $0x38] sm:$0xff]  ;;  %vm1671_vm8 = vcmask 1046534   ;;  %vm1673_vm9 = vcmask 1047559  }
   0x8   :  { %2093 = vmatpush3.bf16.msra.mxu0 %v2090_v31  ;;  %2099 = vmatprep.subr.bf16.mxu1 %v2098_v36  ;;  %v295_v6 = vld [vmem:[%s2865_s11] sm:$0xff]  ;;  %v511_v31 = vld [vmem:[%s2866_s12 + $0x30] sm:$0xff]  ;;  %v512_v34 = vld [vmem:[%s2866_s12 + $0x38] sm:$0xff]  ;;  %s2231_s24 = smov [#allocation2]  }
   0x9   :  { %2095 = vmatprep.subr.bf16.mxu0 %v2094_v33  ;;  %2101 = vmatpush3.bf16.msra.mxu1 %v2098_v36  ;;  %v505_v7 = vld [vmem:[%s2866_s12] sm:$0xff]  ;;  %v304_v36 = vld [vmem:[%s2865_s11 + $0x48] sm:$0xff]  ;;  %v305_v37 = vld [vmem:[%s2865_s11 + $0x50] sm:$0xff]  ;;  %s1768_s25 = sshll.u32 %s2231_s24, 4  ;;  %s1769_s25 = int_to_ptr.vmem [resolvable:$true] %s1768_s25 }
   0xa   :  { %2103 = vmatprep.subr.bf16.mxu1 %v2102_v39  ;;  %v513_v35 = vld [vmem:[%s2866_s12 + $0x40] sm:$0xff]  ;;  %v514_v38 = vld [vmem:[%s2866_s12 + $0x48] sm:$0xff]  ;;  %s2206_s26 = scalar_lea.vmem %s1769_s25, 256  ;;  %p2211_p1 = scmp.lt.s32.totalorder %s1769_s25, %s1769_s25 }
   0xb   :  { %p2207_p0 = scmp.ne.s32.totalorder %s1769_s25, %s2206_s26  ;;  %p2212_p2 = scmp.lt.s32.totalorder %s2206_s26, %s2206_s26 }
   0xc   :  { %2097 = vmatpush3.bf16.msra.mxu0 %v2094_v33  ;;  %v303_v33 = vld [vmem:[%s2865_s11 + $0x40] sm:$0xff] }
   0xd   :  { %2105 = vmatpush3.bf16.msra.mxu1 %v2102_v39  ;;  %v515_v39 = vld [vmem:[%s2866_s12 + $0x50] sm:$0xff]  ;;  %p2213_p3 = por %p2212_p2, %p2211_p1 }
   0xf   :  { %p2214_p4 = pnand %p2213_p3, %p2207_p0 }
  0x90   :  { %v52_v8 = vpop.xlane.xlu0 %51  ;;  %v55_v9 = vpop.xlane.xlu1 %54 }
  0x91   :  { %v57_v10 = vmul.f32 0.03125, %v52_v8  ;;  %v58_v11 = vmul.f32 0.03125, %v55_v9  ;;  %v730_v8 = vld [vmem:[%s2863_s9] sm:$0xff]  ;;  %v731_v9 = vld [vmem:[%s2863_s9 + $0x8] sm:$0xff] }
  0x93   :  { %v59_v12 = vsub.f32 %v47_v0, %v57_v10  ;;  %v2320_v13 = vsub.f32 %v48_v1, %v58_v11 }
  0x94   :  { %v97_v14 = vpop.xlane.xlu0 %96  ;;  %v100_v15 = vpop.xlane.xlu1 %99 }
  0x95   :  { %v101_v16 = vmul.f32 0.03125, %v97_v14  ;;  %v102_v17 = vmul.f32 0.03125, %v100_v15  ;;  %v61_v18 = vmul.f32 %v59_v12, %v59_v12  ;;  %v62_v19 = vmul.f32 %v2320_v13, %v2320_v13  ;;  %v732_v15 = vld [vmem:[%s2863_s9 + $0x10] sm:$0xff] }
  0x97   :  { %v103_v20 = vsub.f32 %v93_v2, %v101_v16  ;;  %v104_v21 = vsub.f32 %v94_v5, %v102_v17  ;;  %v63_v22 = vsel %vm49_vm0, %v61_v18, 0.0  ;;  %v66_v23 = vsel %vm49_vm0, %v62_v19, 0.0  ;;  %v733_v16 = vld [vmem:[%s2863_s9 + $0x18] sm:$0xff]  ;;  %v296_v19 = vld [vmem:[%s2865_s11 + $0x8] sm:$0xff] }
  0x98   :  { %64 = vadd.xlane.f32.xlu0 %v63_v22  ;;  %v506_v22 = vld [vmem:[%s2866_s12 + $0x8] sm:$0xff] }
  0x99   :  { %v105_v24 = vmul.f32 %v103_v20, %v103_v20  ;;  %v106_v25 = vmul.f32 %v104_v21, %v104_v21 }
  0x9b   :  { %v107_v26 = vsel %vm49_vm0, %v105_v24, 0.0  ;;  %v110_v27 = vsel %vm49_vm0, %v106_v25, 0.0  ;;  %v298_v24 = vld [vmem:[%s2865_s11 + $0x18] sm:$0xff]  ;;  %v299_v25 = vld [vmem:[%s2865_s11 + $0x20] sm:$0xff] }
  0x9c   :  { %67 = vadd.xlane.f32.xlu0 %v66_v23  ;;  %108 = vadd.xlane.f32.xlu1 %v107_v26  ;;  %v507_v23 = vld [vmem:[%s2866_s12 + $0x10] sm:$0xff]  ;;  %v508_v26 = vld [vmem:[%s2866_s12 + $0x18] sm:$0xff] }
  0xa0   :  { %111 = vadd.xlane.f32.xlu1 %v110_v27  ;;  %v509_v27 = vld [vmem:[%s2866_s12 + $0x20] sm:$0xff] }
 0x125   :  { %v65_v40 = vpop.xlane.xlu0 %64 }
 0x126   :  { %v69_v41 = vmul.f32 0.03125, %v65_v40  ;;  %v306_v40 = vld [vmem:[%s2865_s11 + $0x58] sm:$0xff] }
 0x128   :  { %v71_v42 = vadd.f32 1e-05, %v69_v41  ;;  %v307_v41 = vld [vmem:[%s2865_s11 + $0x60] sm:$0xff] }
 0x129   :  { %v109_v43 = vpop.xlane.xlu1 %108  ;;  %v68_v44 = vpop.xlane.xlu0 %67 }
 0x12a   :  { %2134 = vrsqrt.f32 %v71_v42  ;;  %v113_v45 = vmul.f32 0.03125, %v109_v43  ;;  %v70_v46 = vmul.f32 0.03125, %v68_v44  ;;  %v516_v42 = vld [vmem:[%s2866_s12 + $0x58] sm:$0xff]  ;;  %v517_v43 = vld [vmem:[%s2866_s12 + $0x60] sm:$0xff]  ;;  %v308_v44 = vld [vmem:[%s2865_s11 + $0x68] sm:$0xff] }
 0x12c   :  { %v115_v47 = vadd.f32 1e-05, %v113_v45  ;;  %v72_v48 = vadd.f32 1e-05, %v70_v46  ;;  %v309_v45 = vld [vmem:[%s2865_s11 + $0x70] sm:$0xff]  ;;  %v518_v46 = vld [vmem:[%s2866_s12 + $0x68] sm:$0xff] }
 0x12d   :  { %v112_v49 = vpop.xlane.xlu1 %111 }
 0x12e   :  { %2136 = vrsqrt.f32 %v115_v47  ;;  %v114_v50 = vmul.f32 0.03125, %v112_v49  ;;  %v519_v47 = vld [vmem:[%s2866_s12 + $0x70] sm:$0xff]  ;;  %v520_v49 = vld [vmem:[%s2866_s12 + $0x78] sm:$0xff] }
 0x12f   :  { %2138 = vrsqrt.f32 %v72_v48  ;;  %v310_v48 = vld [vmem:[%s2865_s11 + $0x78] sm:$0xff] }
 0x130   :  { %v116_v51 = vadd.f32 1e-05, %v114_v50 }
 0x132   :  { %2140 = vrsqrt.f32 %v116_v51 }
 0x134   :  { %v2135_v52 = vpop.eup %2134 }
 0x135   :  { %v75_v54 = vmul.f32 %v2135_v52, %v59_v12 }
 0x137   :  { %v83_v56 = vmul.f32 %v1779_v53, %v75_v54 }
 0x138   :  { %v2137_v57 = vpop.eup %2136 }
 0x139   :  { %v2139_v58 = vpop.eup %2138  ;;  %v91_v59 = vadd.f32 %v1780_v55, %v83_v56  ;;  %v119_v60 = vmul.f32 %v2137_v57, %v103_v20  ;;  %v297_v20 = vld [vmem:[%s2865_s11 + $0x10] sm:$0xff] }
 0x13a   :  { %v76_v61 = vmul.f32 %v2139_v58, %v2320_v13  ;;  %v2114_v13 = vpack.c.bf16 %v731_v9, %v730_v8 }
 0x13b   :  { %1951 = vmatprep.mubr.msk.f32.mxu0 %vm49_vm0, %v91_v59  ;;  %v121_v62 = vmul.f32 %v1779_v53, %v119_v60 }
 0x13c   :  { %v2141_v63 = vpop.eup %2140  ;;  %v84_v0 = vmul.f32 %v1779_v53, %v76_v61 }
 0x13d   :  { %v123_v1 = vadd.f32 %v1780_v55, %v121_v62  ;;  %v120_v2 = vmul.f32 %v2141_v63, %v104_v21  ;;  %v2118_v21 = vpack.c.bf16 %v733_v16, %v732_v15 }
 0x13e   :  { %v92_v3 = vadd.f32 %v1780_v55, %v84_v0 }
 0x13f   :  { %1962 = vmatprep.mubr.msk.f32.mxu1 %vm49_vm0, %v123_v1  ;;  %v122_v4 = vmul.f32 %v1779_v53, %v120_v2 }
 0x140   :  { %1952 = vmatmul.mubr.msk.f32.vlgmr.msra.gmra.mrb[0].mxu0 %vm49_vm0, %v92_v3 }
 0x141   :  { %v124_v5 = vadd.f32 %v1780_v55, %v122_v4  ;;  %1969 = vmatprep.mubr.msk.f32.mxu0 %vm311_vm1, %v295_v6 }
 0x143   :  { %1963 = vmatmul.mubr.msk.f32.vlgmr.msra.gmra.mrb[0].mxu1 %vm49_vm0, %v124_v5 }
 0x144   :  { %1997 = vmatprep.mubr.msk.f32.mxu1 %vm311_vm1, %v505_v7 }
 0x213   :  { %v1953_v10 = vpop.f32.mrb[0].mxu0 }
 0x214   :  { %v201_v11 = vpop.f32.mrb[1].mxu0 }
 0x215   :  { %v2106_v12 = vpack.c.bf16 %v1953_v10, %v201_v11 }
 0x216   :  { %v1964_v14 = vpop.f32.mrb[0].mxu1 }
 0x217   :  { %2107 = vmatprep.subr.bf16.mxu0 %v2106_v12  ;;  %v286_v17 = vpop.f32.mrb[1].mxu1 }
 0x218   :  { %v2110_v18 = vpack.c.bf16 %v1964_v14, %v286_v17  ;;  %2109 = vmatpush3.bf16.msra.mxu0 %v2106_v12 }
 0x219   :  { %2115 = vmatprep.subr.bf16.mxu0 %v2114_v13 }
 0x21a   :  { %2111 = vmatprep.subr.bf16.mxu1 %v2110_v18 }
 0x21b   :  { %2113 = vmatpush3.bf16.msra.mxu1 %v2110_v18  ;;  %1970 = vmatmul.mubr.msk.f32.vlgmr.msra.gmra.mrb[2].mxu0 %vm311_vm1, %v296_v19 }
 0x21c   :  { %1972 = vmatprep.mubr.msk.f32.mxu0 %vm311_vm1, %v297_v20  ;;  %2117 = vmatpush3.bf16.msra.mxu0 %v2114_v13 }
 0x21d   :  { %2119 = vmatprep.subr.bf16.mxu0 %v2118_v21 }
 0x21e   :  { %1998 = vmatmul.mubr.msk.f32.vlgmr.msra.gmra.mrb[2].mxu1 %vm311_vm1, %v506_v22 }
 0x21f   :  { %2000 = vmatprep.mubr.msk.f32.mxu1 %vm311_vm1, %v507_v23  ;;  %1973 = vmatmul.mubr.msk.f32.gmra.mrb[4].mxu0 %vm311_vm1, %v298_v24 }
 0x220   :  { %1975 = vmatprep.mubr.msk.f32.mxu0 %vm311_vm1, %v299_v25  ;;  %2121 = vmatpush3.bf16.msra.mxu0 %v2118_v21 }
 0x222   :  { %2001 = vmatmul.mubr.msk.f32.gmra.mrb[4].mxu1 %vm311_vm1, %v508_v26 }
 0x223   :  { %2003 = vmatprep.mubr.msk.f32.mxu1 %vm311_vm1, %v509_v27  ;;  %1976 = vmatmul.mubr.msk.f32.gmra.mrb[6].mxu0 %vm311_vm1, %v300_v28 }
 0x224   :  { %1978 = vmatprep.mubr.msk.f32.mxu0 %vm311_vm1, %v301_v29 }
 0x226   :  { %2004 = vmatmul.mubr.msk.f32.gmra.mrb[6].mxu1 %vm311_vm1, %v510_v30 }
 0x227   :  { %2006 = vmatprep.mubr.msk.f32.mxu1 %vm311_vm1, %v511_v31  ;;  %1979 = vmatmul.mubr.msk.f32.gmra.mrb[8].mxu0 %vm311_vm1, %v302_v32 }
 0x228   :  { %1981 = vmatprep.mubr.msk.f32.mxu0 %vm311_vm1, %v303_v33 }
 0x22a   :  { %2007 = vmatmul.mubr.msk.f32.gmra.mrb[8].mxu1 %vm311_vm1, %v512_v34  ;;  %v1248_v34 = vld [vmem:[%s2864_s10] sm:$0xff] }
 0x22b   :  { %2009 = vmatprep.mubr.msk.f32.mxu1 %vm311_vm1, %v513_v35  ;;  %1982 = vmatmul.mubr.msk.f32.gmra.mrb[10].mxu0 %vm311_vm1, %v304_v36  ;;  %v735_v35 = vld [vmem:[%s2856_s2 + $0x8] sm:$0xff]  ;;  %v734_v36 = vld [vmem:[%s2856_s2] sm:$0xff] }
 0x22c   :  { %1984 = vmatprep.mubr.msk.f32.mxu0 %vm311_vm1, %v305_v37  ;;  %2053 = vmatprep.subr.mxu1 %v1248_v34 }
 0x22d   :  { %2054 = vmatpush3.msra.mxu1 %v1248_v34 }
 0x22e   :  { %2010 = vmatmul.mubr.msk.f32.gmra.mrb[10].mxu1 %vm311_vm1, %v514_v38 }
 0x22f   :  { %2012 = vmatprep.mubr.msk.f32.mxu1 %vm311_vm1, %v515_v39  ;;  %1985 = vmatmul.mubr.msk.f32.gmra.mrb[12].mxu0 %vm311_vm1, %v306_v40 }
 0x230   :  { %1987 = vmatprep.mubr.msk.f32.mxu0 %vm311_vm1, %v307_v41  ;;  %v737_v41 = vld [vmem:[%s2856_s2 + $0x18] sm:$0xff] }
 0x232   :  { %2013 = vmatmul.mubr.msk.f32.gmra.mrb[12].mxu1 %vm311_vm1, %v516_v42 }
 0x233   :  { %2015 = vmatprep.mubr.msk.f32.mxu1 %vm311_vm1, %v517_v43  ;;  %1988 = vmatmul.mubr.msk.f32.gmra.mrb[14].mxu0 %vm311_vm1, %v308_v44  ;;  %v736_v43 = vld [vmem:[%s2856_s2 + $0x10] sm:$0xff] }
 0x234   :  { %1990 = vmatprep.mubr.msk.f32.mxu0 %vm311_vm1, %v309_v45 }
 0x236   :  { %2016 = vmatmul.mubr.msk.f32.gmra.mrb[14].mxu1 %vm311_vm1, %v518_v46 }
 0x237   :  { %2018 = vmatprep.mubr.msk.f32.mxu1 %vm311_vm1, %v519_v47  ;;  %1991 = vmatmul.mubr.msk.f32.gmra.mrb[16].mxu0 %vm311_vm1, %v310_v48 }
 0x23a   :  { %2019 = vmatmul.mubr.msk.f32.gmra.mrb[16].mxu1 %vm311_vm1, %v520_v49 }
 0x2ee   :  { %v1971_v50 = vpop.f32.mrb[2].mxu0 }
 0x2ef   :  { %v426_v51 = vpop.f32.mrb[3].mxu0 }
 0x2f1   :  { %v1999_v52 = vpop.f32.mrb[2].mxu1 }
 0x2f2   :  { %v715_v53 = vmul.f32 %v1999_v52, %v1971_v50  ;;  %1460 = vrot.lane.b32.xlu1 %v1999_v52, %s2230_s7  ;;  %v635_v54 = vpop.f32.mrb[3].mxu1  ;;  %v1974_v55 = vpop.f32.mrb[4].mxu0  ;;  %v739_v52 = vld [vmem:[%s2856_s2 + $0x28] sm:$0xff] }
 0x2f3   :  { %v714_v56 = vmul.f32 %v635_v54, %v426_v51  ;;  %1458 = vrot.lane.b32.xlu0 %v635_v54, %s2230_s7  ;;  %v436_v57 = vpop.f32.mrb[5].mxu0 }
 0x2f5   :  { %v2002_v58 = vpop.f32.mrb[4].mxu1  ;;  %2029 = vmatprep.mubr.msk.f32.mxu0 %vm49_vm0, %v714_v56 }
 0x2f6   :  { %v717_v59 = vmul.f32 %v2002_v58, %v1974_v55  ;;  %1464 = vrot.lane.b32.xlu1 %v2002_v58, %s2230_s7  ;;  %v645_v60 = vpop.f32.mrb[5].mxu1  ;;  %2030 = vmatmul.mubr.msk.f32.vlgmr.msra.gmra.mrb[18].mxu0 %vm49_vm0, %v715_v53  ;;  %v1977_v61 = vpop.f32.mrb[6].mxu0  ;;  %v738_v55 = vld [vmem:[%s2856_s2 + $0x20] sm:$0xff] }
 0x2f7   :  { %v716_v62 = vmul.f32 %v645_v60, %v436_v57  ;;  %v446_v63 = vpop.f32.mrb[7].mxu0 }
 0x2f9   :  { %v2005_v0 = vpop.f32.mrb[6].mxu1  ;;  %2032 = vmatprep.mubr.msk.f32.mxu0 %vm49_vm0, %v716_v62 }
 0x2fa   :  { %v719_v1 = vmul.f32 %v2005_v0, %v1977_v61  ;;  %1462 = vrot.lane.b32.xlu1 %v645_v60, %s2230_s7  ;;  %v655_v2 = vpop.f32.mrb[7].mxu1  ;;  %2033 = vmatmul.mubr.msk.f32.gmra.mrb[20].mxu0 %vm49_vm0, %v717_v59  ;;  %v1980_v3 = vpop.f32.mrb[8].mxu0 }
 0x2fb   :  { %v718_v4 = vmul.f32 %v655_v2, %v446_v63  ;;  %v456_v5 = vpop.f32.mrb[9].mxu0 }
 0x2fd   :  { %v2008_v6 = vpop.f32.mrb[8].mxu1  ;;  %2035 = vmatprep.mubr.msk.f32.mxu0 %vm49_vm0, %v718_v4 }
 0x2fe   :  { %v721_v7 = vmul.f32 %v2008_v6, %v1980_v3  ;;  %1468 = vrot.lane.b32.xlu1 %v2005_v0, %s2230_s7  ;;  %v665_v8 = vpop.f32.mrb[9].mxu1  ;;  %2036 = vmatmul.mubr.msk.f32.gmra.mrb[22].mxu0 %vm49_vm0, %v719_v1  ;;  %v1983_v9 = vpop.f32.mrb[10].mxu0 }
 0x2ff   :  { %v720_v10 = vmul.f32 %v665_v8, %v456_v5  ;;  %v466_v11 = vpop.f32.mrb[11].mxu0 }
 0x301   :  { %v2011_v12 = vpop.f32.mrb[10].mxu1  ;;  %2038 = vmatprep.mubr.msk.f32.mxu0 %vm49_vm0, %v720_v10 }
 0x302   :  { %v723_v13 = vmul.f32 %v2011_v12, %v1983_v9  ;;  %1466 = vrot.lane.b32.xlu1 %v655_v2, %s2230_s7  ;;  %1476 = vrot.lane.b32.xlu0 %v2011_v12, %s2230_s7  ;;  %v675_v14 = vpop.f32.mrb[11].mxu1  ;;  %v1986_v15 = vpop.f32.mrb[12].mxu0 }
 0x303   :  { %v722_v16 = vmul.f32 %v675_v14, %v466_v11  ;;  %2039 = vmatmul.mubr.msk.f32.gmra.mrb[24].mxu0 %vm49_vm0, %v721_v7  ;;  %v476_v17 = vpop.f32.mrb[13].mxu0  ;;  %v740_v11 = vld [vmem:[%s2856_s2 + $0x30] sm:$0xff] }
 0x305   :  { %v2014_v18 = vpop.f32.mrb[12].mxu1  ;;  %2041 = vmatprep.mubr.msk.f32.mxu0 %vm49_vm0, %v722_v16 }
 0x306   :  { %v725_v19 = vmul.f32 %v2014_v18, %v1986_v15  ;;  %1470 = vrot.lane.b32.xlu1 %v665_v8, %s2230_s7  ;;  %1480 = vrot.lane.b32.xlu0 %v2014_v18, %s2230_s7  ;;  %v685_v20 = vpop.f32.mrb[13].mxu1  ;;  %v1989_v21 = vpop.f32.mrb[14].mxu0 }
 0x307   :  { %v724_v22 = vmul.f32 %v685_v20, %v476_v17  ;;  %2042 = vmatmul.mubr.msk.f32.gmra.mrb[26].mxu0 %vm49_vm0, %v723_v13  ;;  %v486_v23 = vpop.f32.mrb[15].mxu0 }
 0x309   :  { %v2017_v24 = vpop.f32.mrb[14].mxu1  ;;  %2044 = vmatprep.mubr.msk.f32.mxu0 %vm49_vm0, %v724_v22 }
 0x30a   :  { %v727_v25 = vmul.f32 %v2017_v24, %v1989_v21  ;;  %1474 = vrot.lane.b32.xlu1 %v675_v14, %s2230_s7  ;;  %1478 = vrot.lane.b32.xlu0 %v685_v20, %s2230_s7  ;;  %v695_v26 = vpop.f32.mrb[15].mxu1  ;;  %v1992_v27 = vpop.f32.mrb[16].mxu0 }
 0x30b   :  { %v726_v28 = vmul.f32 %v695_v26, %v486_v23  ;;  %2045 = vmatmul.mubr.msk.f32.gmra.mrb[28].mxu0 %vm49_vm0, %v725_v19  ;;  %v496_v29 = vpop.f32.mrb[17].mxu0 }
 0x30d   :  { %v2020_v30 = vpop.f32.mrb[16].mxu1  ;;  %2047 = vmatprep.mubr.msk.f32.mxu0 %vm49_vm0, %v726_v28 }
 0x30e   :  { %v729_v31 = vmul.f32 %v2020_v30, %v1992_v27  ;;  %1472 = vrot.lane.b32.xlu1 %v2008_v6, %s2230_s7  ;;  %1484 = vrot.lane.b32.xlu0 %v2017_v24, %s2230_s7  ;;  %v705_v32 = vpop.f32.mrb[17].mxu1  ;;  %v741_v6 = vld [vmem:[%s2856_s2 + $0x38] sm:$0xff] }
 0x30f   :  { %v728_v33 = vmul.f32 %v705_v32, %v496_v29  ;;  %2048 = vmatmul.mubr.msk.f32.gmra.mrb[30].mxu0 %vm49_vm0, %v727_v25 }
 0x311   :  { %2050 = vmatprep.mubr.msk.f32.mxu0 %vm49_vm0, %v728_v33 }
 0x312   :  { %1482 = vrot.lane.b32.xlu0 %v695_v26, %s2230_s7  ;;  %1488 = vrot.lane.b32.xlu1 %v2020_v30, %s2230_s7 }
 0x313   :  { %2051 = vmatmul.mubr.msk.f32.gmra.mrb[32].mxu0 %vm49_vm0, %v729_v31 }
 0x316   :  { %1486 = vrot.lane.b32.xlu0 %v705_v32, %s2230_s7 }
 0x3c9   :  { %v2031_v37 = vpop.f32.mrb[18].mxu0 }
 0x3ca   :  { %v870_v38 = vadd.f32 %v2031_v37, %v735_v35  ;;  %v864_v39 = vpop.f32.mrb[19].mxu0 }
 0x3cb   :  { %v2544_v40 = vadd.f32 %v864_v39, %v734_v36 }
 0x3cc   :  { %v951_v42 = vsel %vm943_vm2, %v870_v38, -inf }
 0x3cd   :  { %v952_v44 = vrot.slane %v951_v42, 4  ;;  %v944_v45 = vsel %vm943_vm2, %v2544_v40, -inf  ;;  %v2034_v46 = vpop.f32.mrb[20].mxu0 }
 0x3ce   :  { %v945_v47 = vrot.slane %v944_v45, 4  ;;  %v2555_v48 = vadd.f32 %v2034_v46, %v737_v41  ;;  %v874_v49 = vpop.f32.mrb[21].mxu0 }
 0x3cf   :  { %v953_v50 = vmax.f32 %v951_v42, %v952_v44  ;;  %v2557_v51 = vadd.f32 %v874_v49, %v736_v43  ;;  %v743_v44 = vld [vmem:[%s2856_s2 + $0x48] sm:$0xff] }
 0x3d0   :  { %v946_v53 = vmax.f32 %v944_v45, %v945_v47  ;;  %v965_v54 = vsel %vm943_vm2, %v2555_v48, -inf  ;;  %v742_v47 = vld [vmem:[%s2856_s2 + $0x40] sm:$0xff] }
 0x3d1   :  { %v954_v56 = vrot.slane %v953_v50, 2  ;;  %v966_v57 = vrot.slane %v965_v54, 4  ;;  %v958_v58 = vsel %vm943_vm2, %v2557_v51, -inf  ;;  %v2037_v59 = vpop.f32.mrb[22].mxu0 }
 0x3d2   :  { %v947_v60 = vrot.slane %v946_v53, 2  ;;  %v959_v61 = vrot.slane %v958_v58, 4  ;;  %v2569_v62 = vadd.f32 %v2037_v59, %v739_v52  ;;  %v884_v63 = vpop.f32.mrb[23].mxu0 }
 0x3d3   :  { %v955_v0 = vmax.f32 %v953_v50, %v954_v56  ;;  %v967_v1 = vmax.f32 %v965_v54, %v966_v57  ;;  %v2571_v2 = vadd.f32 %v884_v63, %v738_v55  ;;  %v745_v63 = vld [vmem:[%s2856_s2 + $0x58] sm:$0xff] }
 0x3d4   :  { %v948_v3 = vmax.f32 %v946_v53, %v947_v60  ;;  %v960_v4 = vmax.f32 %v958_v58, %v959_v61  ;;  %v979_v5 = vsel %vm943_vm2, %v2569_v62, -inf }
 0x3d5   :  { %v956_v7 = vrot.slane %v955_v0, 1  ;;  %v968_v8 = vrot.slane %v967_v1, 2  ;;  %v980_v9 = vrot.slane %v979_v5, 4  ;;  %v972_v10 = vsel %vm943_vm2, %v2571_v2, -inf }
 0x3d6   :  { %v949_v12 = vrot.slane %v948_v3, 1  ;;  %v961_v13 = vrot.slane %v960_v4, 2  ;;  %v973_v14 = vrot.slane %v972_v10, 4  ;;  %v2040_v15 = vpop.f32.mrb[24].mxu0 }
 0x3d7   :  { %v957_v16 = vmax.f32 %v955_v0, %v956_v7  ;;  %v969_v17 = vmax.f32 %v967_v1, %v968_v8  ;;  %v981_v18 = vmax.f32 %v979_v5, %v980_v9  ;;  %v2583_v19 = vadd.f32 %v2040_v15, %v741_v6  ;;  %v894_v20 = vpop.f32.mrb[25].mxu0  ;;  %v744_v6 = vld [vmem:[%s2856_s2 + $0x50] sm:$0xff] }
 0x3d8   :  { %v950_v21 = vmax.f32 %v948_v3, %v949_v12  ;;  %v962_v22 = vmax.f32 %v960_v4, %v961_v13  ;;  %v974_v23 = vmax.f32 %v972_v10, %v973_v14  ;;  %v2585_v24 = vadd.f32 %v894_v20, %v740_v11 }
 0x3d9   :  { %v1057_v25 = vsub.f32 %v870_v38, %v957_v16  ;;  %v970_v26 = vrot.slane %v969_v17, 1  ;;  %v982_v27 = vrot.slane %v981_v18, 2  ;;  %v993_v28 = vsel %vm943_vm2, %v2583_v19, -inf }
 0x3da   :  { %v1056_v29 = vsub.f32 %v2544_v40, %v950_v21  ;;  %v963_v30 = vrot.slane %v962_v22, 1  ;;  %v975_v31 = vrot.slane %v974_v23, 2  ;;  %v994_v32 = vrot.slane %v993_v28, 4  ;;  %v2043_v33 = vpop.f32.mrb[26].mxu0 }
 0x3db   :  { %v1074_v34 = vmul.f32 1.442695, %v1057_v25  ;;  %v971_v35 = vmax.f32 %v969_v17, %v970_v26  ;;  %v983_v36 = vmax.f32 %v981_v18, %v982_v27  ;;  %v986_v37 = vsel %vm943_vm2, %v2585_v24, -inf  ;;  %v904_v39 = vpop.f32.mrb[27].mxu0 }
 0x3dc   :  { %v1072_v41 = vmul.f32 1.442695, %v1056_v29  ;;  %v964_v38 = vmax.f32 %v962_v22, %v963_v30  ;;  %v976_v42 = vmax.f32 %v974_v23, %v975_v31  ;;  %v995_v43 = vmax.f32 %v993_v28, %v994_v32 }
 0x3dd   :  { %2142 = vpow2.f32 %v1074_v34  ;;  %v1059_v40 = vsub.f32 %v2555_v48, %v971_v35  ;;  %v984_v45 = vrot.slane %v983_v36, 1  ;;  %v987_v46 = vrot.slane %v986_v37, 4 }
 0x3de   :  { %2144 = vpow2.f32 %v1072_v41  ;;  %v1058_v49 = vsub.f32 %v2557_v51, %v964_v38  ;;  %v977_v50 = vrot.slane %v976_v42, 1  ;;  %v996_v52 = vrot.slane %v995_v43, 2  ;;  %v2046_v53 = vpop.f32.mrb[28].mxu0 }
 0x3df   :  { %v1078_v54 = vmul.f32 1.442695, %v1059_v40  ;;  %v985_v55 = vmax.f32 %v983_v36, %v984_v45  ;;  %v988_v56 = vmax.f32 %v986_v37, %v987_v46  ;;  %v2600_v57 = vadd.f32 %v2043_v33, %v743_v44  ;;  %v914_v58 = vpop.f32.mrb[29].mxu0 }
 0x3e0   :  { %v1076_v59 = vmul.f32 1.442695, %v1058_v49  ;;  %v978_v48 = vmax.f32 %v976_v42, %v977_v50  ;;  %v997_v60 = vmax.f32 %v995_v43, %v996_v52  ;;  %v2602_v61 = vadd.f32 %v904_v39, %v742_v47 }
 0x3e1   :  { %2146 = vpow2.f32 %v1078_v54  ;;  %v1061_v51 = vsub.f32 %v2569_v62, %v985_v55  ;;  %v989_v0 = vrot.slane %v988_v56, 2  ;;  %v1007_v1 = vsel %vm943_vm2, %v2600_v57, -inf }
 0x3e2   :  { %2148 = vpow2.f32 %v1076_v59  ;;  %v1060_v3 = vsub.f32 %v2571_v2, %v978_v48  ;;  %v998_v4 = vrot.slane %v997_v60, 1  ;;  %v1008_v5 = vrot.slane %v1007_v1, 4  ;;  %v2614_v7 = vpop.f32.mrb[30].mxu0 }
 0x3e3   :  { %v1082_v8 = vmul.f32 1.442695, %v1061_v51  ;;  %v990_v9 = vmax.f32 %v988_v56, %v989_v0  ;;  %v1000_v62 = vsel %vm943_vm2, %v2602_v61, -inf  ;;  %v2618_v10 = vadd.f32 %v2046_v53, %v745_v63  ;;  %v2620_v11 = vpop.f32.mrb[31].mxu0  ;;  %v747_v0 = vld [vmem:[%s2856_s2 + $0x68] sm:$0xff] }
 0x3e4   :  { %v1080_v12 = vmul.f32 1.442695, %v1060_v3  ;;  %v999_v13 = vmax.f32 %v997_v60, %v998_v4  ;;  %v1009_v2 = vmax.f32 %v1007_v1, %v1008_v5  ;;  %v1001_v14 = vrot.slane %v1000_v62, 4 }
 0x3e5   :  { %2150 = vpow2.f32 %v1082_v8  ;;  %v991_v15 = vrot.slane %v990_v9, 1  ;;  %v1021_v16 = vsel %vm943_vm2, %v2618_v10, -inf  ;;  %v2624_v17 = vadd.f32 %v914_v58, %v744_v6 }
 0x3e6   :  { %2152 = vpow2.f32 %v1080_v12  ;;  %v1063_v18 = vsub.f32 %v2583_v19, %v999_v13  ;;  %v1010_v20 = vrot.slane %v1009_v2, 2  ;;  %v1002_v21 = vmax.f32 %v1000_v62, %v1001_v14  ;;  %v2627_v22 = vpop.f32.mrb[32].mxu0 }
 0x3e7   :  { %v2629_v23 = vpop.eup %2142  ;;  %v992_v25 = vmax.f32 %v990_v9, %v991_v15  ;;  %v1022_v26 = vrot.slane %v1021_v16, 4  ;;  %v1014_v27 = vsel %vm943_vm2, %v2624_v17, -inf  ;;  %v2633_v28 = vpop.f32.mrb[33].mxu0 }
 0x3e8   :  { %v2635_v29 = vpop.eup %2144  ;;  %v1111_v30 = vsel %vm943_vm2, %v2629_v23, 0.0  ;;  %v1086_v31 = vmul.f32 1.442695, %v1063_v18  ;;  %v1011_v19 = vmax.f32 %v1009_v2, %v1010_v20  ;;  %v1003_v32 = vrot.slane %v1002_v21, 2 }
 0x3e9   :  { %v1112_v33 = vrot.slane %v1111_v30, 4  ;;  %v1104_v34 = vsel %vm943_vm2, %v2635_v29, 0.0  ;;  %v1062_v35 = vsub.f32 %v2585_v24, %v992_v25  ;;  %v1023_v36 = vmax.f32 %v1021_v16, %v1022_v26 }
 0x3ea   :  { %v1105_v37 = vrot.slane %v1104_v34, 4  ;;  %2154 = vpow2.f32 %v1086_v31  ;;  %v1012_v39 = vrot.slane %v1011_v19, 1  ;;  %v1004_v41 = vmax.f32 %v1002_v21, %v1003_v32 }
 0x3eb   :  { %v2642_v38 = vpop.eup %2146  ;;  %v1113_v42 = vadd.f32 %v1112_v33, %v1111_v30  ;;  %v1084_v43 = vmul.f32 1.442695, %v1062_v35  ;;  %v1024_v44 = vrot.slane %v1023_v36, 2  ;;  %v1015_v40 = vrot.slane %v1014_v27, 4 }
 0x3ec   :  { %v2644_v45 = vpop.eup %2148  ;;  %v1106_v46 = vadd.f32 %v1105_v37, %v1104_v34  ;;  %v1125_v47 = vsel %vm943_vm2, %v2642_v38, 0.0  ;;  %v1013_v49 = vmax.f32 %v1011_v19, %v1012_v39  ;;  %v1005_v50 = vrot.slane %v1004_v41, 1 }
 0x3ed   :  { %v1114_v24 = vrot.slane %v1113_v42, 2  ;;  %v1126_v52 = vrot.slane %v1125_v47, 4  ;;  %v1118_v53 = vsel %vm943_vm2, %v2644_v45, 0.0  ;;  %2156 = vpow2.f32 %v1084_v43 }
 0x3ee   :  { %v1107_v54 = vrot.slane %v1106_v46, 2  ;;  %v1119_v55 = vrot.slane %v1118_v53, 4  ;;  %v1065_v56 = vsub.f32 %v2600_v57, %v1013_v49  ;;  %v1006_v58 = vmax.f32 %v1004_v41, %v1005_v50  ;;  %v746_v41 = vld [vmem:[%s2856_s2 + $0x60] sm:$0xff] }
 0x3ef   :  { %v2651_v59 = vpop.eup %2150  ;;  %v1115_v48 = vadd.f32 %v1114_v24, %v1113_v42  ;;  %v1127_v60 = vadd.f32 %v1126_v52, %v1125_v47  ;;  %v1025_v63 = vmax.f32 %v1023_v36, %v1024_v44  ;;  %v1016_v51 = vmax.f32 %v1014_v27, %v1015_v40  ;;  %v749_v40 = vld [vmem:[%s2856_s2 + $0x78] sm:$0xff]  ;;  %v748_v24 = vld [vmem:[%s2856_s2 + $0x70] sm:$0xff] }
 0x3f0   :  { %v2656_v1 = vpop.eup %2152  ;;  %v2658_v3 = vadd.f32 %v1107_v54, %v1106_v46  ;;  %v1120_v4 = vadd.f32 %v1119_v55, %v1118_v53  ;;  %v1139_v5 = vsel %vm943_vm2, %v2651_v59, 0.0  ;;  %v1090_v57 = vmul.f32 1.442695, %v1065_v56 }
 0x3f1   :  { %v1116_v6 = vrot.slane %v1115_v48, 1  ;;  %v1128_v8 = vrot.slane %v1127_v60, 2  ;;  %v1140_v9 = vrot.slane %v1139_v5, 4  ;;  %v1132_v62 = vsel %vm943_vm2, %v2656_v1, 0.0 }
 0x3f2   :  { %v1121_v12 = vrot.slane %v1120_v4, 2  ;;  %v1133_v13 = vrot.slane %v1132_v62, 4  ;;  %2158 = vpow2.f32 %v1090_v57  ;;  %v2665_v2 = vadd.f32 %v2614_v7, %v747_v0 }
 0x3f3   :  { %v1117_v14 = vadd.f32 %v1116_v6, %v1115_v48  ;;  %v2667_v15 = vadd.f32 %v1128_v8, %v1127_v60  ;;  %v1141_v16 = vadd.f32 %v1140_v9, %v1139_v5  ;;  %v1064_v18 = vsub.f32 %v2602_v61, %v1006_v58 }
 0x3f4   :  { %v2670_v20 = vpop.eup %2154  ;;  %v2672_v21 = vadd.f32 %v1121_v12, %v1120_v4  ;;  %v1134_v25 = vadd.f32 %v1133_v13, %v1132_v62  ;;  %v1026_v26 = vrot.slane %v1025_v63, 1  ;;  %v1017_v27 = vrot.slane %v1016_v51, 2 }
 0x3f5   :  { %2160 = vrcp.f32 %v1117_v14  ;;  %v1109_v30 = vrot.slane %v2658_v3, 1  ;;  %v1142_v31 = vrot.slane %v1141_v16, 2  ;;  %v1153_v7 = vsel %vm943_vm2, %v2670_v20, 0.0 }
 0x3f6   :  { %v1130_v19 = vrot.slane %v2667_v15, 1  ;;  %v1135_v32 = vrot.slane %v1134_v25, 2  ;;  %v1154_v33 = vrot.slane %v1153_v7, 4  ;;  %v1088_v34 = vmul.f32 1.442695, %v1064_v18 }
 0x3f7   :  { %v2678_v61 = vpop.eup %2156  ;;  %v2680_v35 = vadd.f32 %v1142_v31, %v1141_v16  ;;  %v1027_v36 = vmax.f32 %v1025_v63, %v1026_v26  ;;  %v1018_v37 = vmax.f32 %v1016_v51, %v1017_v27  ;;  %v1035_v39 = vsel %vm943_vm2, %v2665_v2, -inf }
 0x3f8   :  { %v1123_v42 = vrot.slane %v2672_v21, 1  ;;  %v1155_v43 = vadd.f32 %v1154_v33, %v1153_v7  ;;  %v1146_v44 = vsel %vm943_vm2, %v2678_v61, 0.0  ;;  %2162 = vpow2.f32 %v1088_v34 }
 0x3f9   :  { %v2693_v46 = vadd.f32 %v1135_v32, %v1134_v25  ;;  %v1147_v47 = vrot.slane %v1146_v44, 4  ;;  %v1067_v49 = vsub.f32 %v2618_v10, %v1027_v36  ;;  %v1019_v50 = vrot.slane %v1018_v37, 1 }
 0x3fa   :  { %v1144_v52 = vrot.slane %v2680_v35, 1  ;;  %v1156_v53 = vrot.slane %v1155_v43, 2  ;;  %v1036_v54 = vrot.slane %v1035_v39, 4  ;;  %v2701_v55 = vadd.f32 %v2620_v11, %v746_v41 }
 0x3fb   :  { %v1148_v56 = vadd.f32 %v1147_v47, %v1146_v44  ;;  %v1094_v58 = vmul.f32 1.442695, %v1067_v49  ;;  %v1020_v48 = vmax.f32 %v1018_v37, %v1019_v50  ;;  %v2704_v60 = vadd.f32 %v2627_v22, %v749_v40 }
 0x3fc   :  { %v2706_v63 = vpop.eup %2158  ;;  %v2708_v10 = vadd.f32 %v1156_v53, %v1155_v43  ;;  %v1037_v51 = vmax.f32 %v1035_v39, %v1036_v54  ;;  %v1028_v0 = vsel %vm943_vm2, %v2701_v55, -inf  ;;  %v2713_v4 = vadd.f32 %v2633_v28, %v748_v24 }
 0x3fd   :  { %v1149_v5 = vrot.slane %v1148_v56, 2  ;;  %v1167_v11 = vsel %vm943_vm2, %v2706_v63, 0.0  ;;  %2164 = vpow2.f32 %v1094_v58  ;;  %v1066_v57 = vsub.f32 %v2624_v17, %v1020_v48 }
 0x3fe   :  { %v1137_v22 = vrot.slane %v2693_v46, 1  ;;  %v1168_v6 = vrot.slane %v1167_v11, 4  ;;  %v1038_v8 = vrot.slane %v1037_v51, 2  ;;  %v1029_v9 = vrot.slane %v1028_v0, 4 }
 0x3ff   :  { %v2719_v62 = vpop.eup %2160  ;;  %v2721_v12 = vadd.f32 %v1149_v5, %v1148_v56  ;;  %v1092_v13 = vmul.f32 1.442695, %v1066_v57  ;;  %v1049_v28 = vsel %vm943_vm2, %v2704_v60, -inf  ;;  %v1042_v14 = vsel %vm943_vm2, %v2713_v4, -inf }
 0x400   :  { %v1158_v16 = vrot.slane %v2708_v10, 1  ;;  %v1169_v18 = vadd.f32 %v1168_v6, %v1167_v11  ;;  %v1039_v17 = vmax.f32 %v1037_v51, %v1038_v8  ;;  %v1030_v25 = vmax.f32 %v1028_v0, %v1029_v9 }
 0x401   :  { %v1151_v26 = vrot.slane %v2721_v12, 1  ;;  %2166 = vpow2.f32 %v1092_v13  ;;  %v1050_v27 = vrot.slane %v1049_v28, 4  ;;  %v1043_v31 = vrot.slane %v1042_v14, 4 }
 0x402   :  { %v2729_v7 = vpop.eup %2162  ;;  %v1170_v32 = vrot.slane %v1169_v18, 2  ;;  %v1040_v33 = vrot.slane %v1039_v17, 1  ;;  %v1031_v34 = vrot.slane %v1030_v25, 2  ;;  %v1110_v36 = vadd.f32 %v1109_v30, %v2658_v3 }
 0x403   :  { %v1160_v37 = vsel %vm943_vm2, %v2729_v7, 0.0  ;;  %v1051_v39 = vmax.f32 %v1049_v28, %v1050_v27  ;;  %v1044_v41 = vmax.f32 %v1042_v14, %v1043_v31  ;;  %v1124_v43 = vadd.f32 %v1123_v42, %v2672_v21 }
 0x404   :  { %v1171_v44 = vadd.f32 %v1170_v32, %v1169_v18  ;;  %v1161_v40 = vrot.slane %v1160_v37, 4  ;;  %v1041_v47 = vmax.f32 %v1039_v17, %v1040_v33  ;;  %v1032_v49 = vmax.f32 %v1030_v25, %v1031_v34 }
 0x405   :  { %v1052_v50 = vrot.slane %v1051_v39, 2  ;;  %v1045_v24 = vrot.slane %v1044_v41, 2  ;;  %2168 = vrcp.f32 %v1110_v36  ;;  %v1131_v53 = vadd.f32 %v1130_v19, %v2667_v15 }
 0x406   :  { %v1172_v54 = vrot.slane %v1171_v44, 1  ;;  %v1162_v3 = vadd.f32 %v1161_v40, %v1160_v37  ;;  %v1069_v30 = vsub.f32 %v2665_v2, %v1041_v47  ;;  %v1033_v56 = vrot.slane %v1032_v49, 1 }
 0x407   :  { %v2739_v58 = vpop.eup %2164  ;;  %v1053_v48 = vmax.f32 %v1051_v39, %v1052_v50  ;;  %v1046_v21 = vmax.f32 %v1044_v41, %v1045_v24  ;;  %2170 = vrcp.f32 %v1124_v43  ;;  %v1138_v42 = vadd.f32 %v1137_v22, %v2693_v46 }
 0x408   :  { %v1163_v51 = vrot.slane %v1162_v3, 2  ;;  %v1181_v0 = vsel %vm943_vm2, %v2739_v58, 0.0  ;;  %v1098_v5 = vmul.f32 1.442695, %v1069_v30  ;;  %v1034_v11 = vmax.f32 %v1032_v49, %v1033_v56 }
 0x409   :  { %v1182_v57 = vrot.slane %v1181_v0, 4  ;;  %v1054_v15 = vrot.slane %v1053_v48, 1  ;;  %v1047_v19 = vrot.slane %v1046_v21, 1  ;;  %2172 = vrcp.f32 %v1131_v53 }
 0x40a   :  { %v1164_v6 = vadd.f32 %v1163_v51, %v1162_v3  ;;  %2174 = vpow2.f32 %v1098_v5  ;;  %v1068_v2 = vsub.f32 %v2701_v55, %v1034_v11  ;;  %v1145_v8 = vadd.f32 %v1144_v52, %v2680_v35 }
 0x40b   :  { %v2748_v9 = vpop.eup %2166  ;;  %v1183_v46 = vadd.f32 %v1182_v57, %v1181_v0  ;;  %v1055_v22 = vmax.f32 %v1053_v48, %v1054_v15  ;;  %v1048_v13 = vmax.f32 %v1046_v21, %v1047_v19  ;;  %2176 = vrcp.f32 %v1138_v42 }
 0x40c   :  { %v1165_v28 = vrot.slane %v1164_v6, 1  ;;  %v1174_v14 = vsel %vm943_vm2, %v2748_v9, 0.0  ;;  %v1096_v18 = vmul.f32 1.442695, %v1068_v2  ;;  %2178 = vrcp.f32 %v1145_v8 }
 0x40d   :  { %v1184_v17 = vrot.slane %v1183_v46, 2  ;;  %v1175_v25 = vrot.slane %v1174_v14, 4  ;;  %v1071_v55 = vsub.f32 %v2704_v60, %v1055_v22  ;;  %v1070_v27 = vsub.f32 %v2713_v4, %v1048_v13 }
 0x40e   :  { %2180 = vpow2.f32 %v1096_v18  ;;  %v1152_v35 = vadd.f32 %v1151_v26, %v2721_v12  ;;  %v1159_v52 = vadd.f32 %v1158_v16, %v2708_v10  ;;  %v1233_v37 = vmul.f32 %v2719_v62, %v2629_v23 }
 0x40f   :  { %v2169_v31 = vpop.eup %2168  ;;  %v1185_v32 = vadd.f32 %v1184_v17, %v1183_v46  ;;  %v1176_v33 = vadd.f32 %v1175_v25, %v1174_v14  ;;  %v1102_v34 = vmul.f32 1.442695, %v1071_v55  ;;  %v1100_v36 = vmul.f32 1.442695, %v1070_v27 }
 0x410   :  { %v1232_v39 = vmul.f32 %v2169_v31, %v2635_v29  ;;  %2182 = vrcp.f32 %v1152_v35  ;;  %v1166_v41 = vadd.f32 %v1165_v28, %v1164_v6  ;;  %v1173_v40 = vadd.f32 %v1172_v54, %v1171_v44 }
 0x411   :  { %v2171_v60 = vpop.eup %2170  ;;  %v1186_v43 = vrot.slane %v1185_v32, 1  ;;  %v1177_v4 = vrot.slane %v1176_v33, 2  ;;  %2184 = vpow2.f32 %v1102_v34 }
 0x412   :  { %2186 = vpow2.f32 %v1100_v36  ;;  %2055 = vmatprep.mubr.msk.f32.mxu1 %vm943_vm2, %v1232_v39  ;;  %v1234_v10 = vmul.f32 %v2171_v60, %v2644_v45 }
 0x413   :  { %v2173_v12 = vpop.eup %2172  ;;  %v1178_v16 = vadd.f32 %v1177_v4, %v1176_v33  ;;  %2056 = vmatmul.mubr.msk.f32.vlgmr.msra.gmra.mrb[18].mxu1 %vm943_vm2, %v1233_v37  ;;  %2188 = vrcp.f32 %v1159_v52  ;;  %v1187_v29 = vadd.f32 %v1186_v43, %v1185_v32 }
 0x414   :  { %v2762_v23 = vpop.eup %2174  ;;  %2058 = vmatprep.mubr.msk.f32.mxu1 %vm943_vm2, %v1234_v10  ;;  %2190 = vrcp.f32 %v1166_v41  ;;  %v1235_v47 = vmul.f32 %v2173_v12, %v2642_v38  ;;  %v1635_v10 = vld [vmem:[%s2859_s5 + $0x8] sm:$0xff] }
 0x415   :  { %v2177_v62 = vpop.eup %2176  ;;  %v1179_v26 = vrot.slane %v1178_v16, 1  ;;  %v1195_v44 = vsel %vm943_vm2, %v2762_v23, 0.0  ;;  %2192 = vrcp.f32 %v1173_v40  ;;  %v1634_v40 = vld [vmem:[%s2859_s5] sm:$0xff] }
 0x416   :  { %v2179_v45 = vpop.eup %2178  ;;  %v1196_v49 = vrot.slane %v1195_v44, 4  ;;  %v1236_v50 = vmul.f32 %v2177_v62, %v2656_v1  ;;  %2194 = vrcp.f32 %v1187_v29  ;;  %v2122_v12 = vpack.c.bf16 %v1635_v10, %v1634_v40  ;;  %v1461_v62 = vpop.permute.xlu1 %1460 }
 0x417   :  { %2059 = vmatmul.mubr.msk.f32.gmra.mrb[20].mxu1 %vm943_vm2, %v1235_v47  ;;  %v1180_v24 = vadd.f32 %v1179_v26, %v1178_v16  ;;  %v1237_v30 = vmul.f32 %v2179_v45, %v2651_v59  ;;  %v1636_v16 = vld [vmem:[%s2859_s5 + $0x10] sm:$0xff] }
 0x418   :  { %v2181_v53 = vpop.eup %2180  ;;  %v1197_v54 = vadd.f32 %v1196_v49, %v1195_v44  ;;  %2061 = vmatprep.mubr.msk.f32.mxu1 %vm943_vm2, %v1236_v50  ;;  %2123 = vmatprep.subr.bf16.mxu0 %v2122_v12  ;;  %v1459_v49 = vpop.permute.xlu0 %1458 }
 0x419   :  { %v1188_v3 = vsel %vm943_vm2, %v2181_v53, 0.0  ;;  %2196 = vrcp.f32 %v1180_v24  ;;  %2125 = vmatpush3.bf16.msra.mxu0 %v2122_v12 }
 0x41a   :  { %v2183_v56 = vpop.eup %2182  ;;  %v1198_v38 = vrot.slane %v1197_v54, 2  ;;  %v1189_v48 = vrot.slane %v1188_v3, 4  ;;  %v1465_v26 = vpop.permute.xlu1 %1464 }
 0x41b   :  { %v2185_v21 = vpop.eup %2184  ;;  %2062 = vmatmul.mubr.msk.f32.gmra.mrb[22].mxu1 %vm943_vm2, %v1237_v30  ;;  %v1238_v1 = vmul.f32 %v2183_v56, %v2678_v61 }
 0x41c   :  { %v2187_v42 = vpop.eup %2186  ;;  %v1199_v51 = vadd.f32 %v1198_v38, %v1197_v54  ;;  %v1190_v0 = vadd.f32 %v1189_v48, %v1188_v3  ;;  %v1209_v5 = vsel %vm943_vm2, %v2185_v21, 0.0 }
 0x41d   :  { %v2189_v11 = vpop.eup %2188  ;;  %v1210_v57 = vrot.slane %v1209_v5, 4  ;;  %v1202_v15 = vsel %vm943_vm2, %v2187_v42, 0.0  ;;  %2064 = vmatprep.mubr.msk.f32.mxu1 %vm943_vm2, %v1238_v1 }
 0x41e   :  { %v2191_v59 = vpop.eup %2190  ;;  %v1200_v19 = vrot.slane %v1199_v51, 1  ;;  %v1191_v6 = vrot.slane %v1190_v0, 2  ;;  %v1203_v2 = vrot.slane %v1202_v15, 4  ;;  %v1239_v8 = vmul.f32 %v2189_v11, %v2670_v20  ;;  %v1463_v44 = vpop.permute.xlu1 %1462 }
 0x41f   :  { %v2193_v46 = vpop.eup %2192  ;;  %v1211_v22 = vadd.f32 %v1210_v57, %v1209_v5  ;;  %v1240_v61 = vmul.f32 %v2191_v59, %v2729_v7 }
 0x420   :  { %v1192_v13 = vadd.f32 %v1191_v6, %v1190_v0  ;;  %v1204_v28 = vadd.f32 %v1203_v2, %v1202_v15  ;;  %2065 = vmatmul.mubr.msk.f32.gmra.mrb[24].mxu1 %vm943_vm2, %v1239_v8  ;;  %v1201_v18 = vadd.f32 %v1200_v19, %v1199_v51  ;;  %v2195_v17 = vpop.eup %2194  ;;  %v1241_v27 = vmul.f32 %v2193_v46, %v2706_v63  ;;  %v1477_v15 = vpop.permute.xlu0 %1476 }
 0x421   :  { %v1212_v14 = vrot.slane %v1211_v22, 2  ;;  %2067 = vmatprep.mubr.msk.f32.mxu1 %vm943_vm2, %v1240_v61  ;;  %v1243_v34 = vmul.f32 %v2195_v17, %v2739_v58 }
 0x422   :  { %v1193_v25 = vrot.slane %v1192_v13, 1  ;;  %v1205_v55 = vrot.slane %v1204_v28, 2  ;;  %2198 = vrcp.f32 %v1201_v18  ;;  %v1469_v47 = vpop.permute.xlu1 %1468 }
 0x423   :  { %v2197_v35 = vpop.eup %2196  ;;  %v1213_v52 = vadd.f32 %v1212_v14, %v1211_v22 }
 0x424   :  { %v1206_v20 = vadd.f32 %v1205_v55, %v1204_v28  ;;  %2068 = vmatmul.mubr.msk.f32.gmra.mrb[26].mxu1 %vm943_vm2, %v1241_v27  ;;  %v1242_v7 = vmul.f32 %v2197_v35, %v2748_v9  ;;  %v1194_v31 = vadd.f32 %v1193_v25, %v1192_v13 }
 0x425   :  { %v1214_v32 = vrot.slane %v1213_v52, 1 }
 0x426   :  { %v1207_v33 = vrot.slane %v1206_v20, 1  ;;  %2070 = vmatprep.mubr.msk.f32.mxu1 %vm943_vm2, %v1242_v7  ;;  %2200 = vrcp.f32 %v1194_v31  ;;  %v1467_v45 = vpop.permute.xlu1 %1466 }
 0x427   :  { %v1215_v36 = vadd.f32 %v1214_v32, %v1213_v52 }
 0x428   :  { %2071 = vmatmul.mubr.msk.f32.gmra.mrb[28].mxu1 %vm943_vm2, %v1243_v34  ;;  %v1208_v63 = vadd.f32 %v1207_v33, %v1206_v20  ;;  %v1481_v34 = vpop.permute.xlu0 %1480 }
 0x429   :  { %2202 = vrcp.f32 %v1215_v36 }
 0x42a   :  { %2204 = vrcp.f32 %v1208_v63  ;;  %v1471_v24 = vpop.permute.xlu1 %1470 }
 0x42c   :  { %v2199_v37 = vpop.eup %2198 }
 0x42d   :  { %v1245_v9 = vmul.f32 %v2199_v37, %v2762_v23  ;;  %v1637_v23 = vld [vmem:[%s2859_s5 + $0x18] sm:$0xff] }
 0x42e   :  { %v2126_v29 = vpack.c.bf16 %v1637_v23, %v1636_v16  ;;  %v1475_v5 = vpop.permute.xlu1 %1474 }
 0x430   :  { %v2201_v39 = vpop.eup %2200  ;;  %2127 = vmatprep.subr.bf16.mxu0 %v2126_v29 }
 0x431   :  { %v1244_v41 = vmul.f32 %v2201_v39, %v2181_v53  ;;  %2129 = vmatpush3.bf16.msra.mxu0 %v2126_v29 }
 0x432   :  { %v1473_v20 = vpop.permute.xlu1 %1472 }
 0x433   :  { %v2203_v60 = vpop.eup %2202  ;;  %2073 = vmatprep.mubr.msk.f32.mxu1 %vm943_vm2, %v1244_v41 }
 0x434   :  { %v2205_v43 = vpop.eup %2204  ;;  %2074 = vmatmul.mubr.msk.f32.gmra.mrb[30].mxu1 %vm943_vm2, %v1245_v9  ;;  %v1247_v58 = vmul.f32 %v2203_v60, %v2185_v21 }
 0x435   :  { %v1246_v4 = vmul.f32 %v2205_v43, %v2187_v42 }
 0x437   :  { %2076 = vmatprep.mubr.msk.f32.mxu1 %vm943_vm2, %v1246_v4 }
 0x438   :  { %2077 = vmatmul.mubr.msk.f32.gmra.mrb[32].mxu1 %vm943_vm2, %v1247_v58 }
 0x4e6   :  { %v2057_v50 = vpop.f32.mrb[18].mxu1 }
 0x4e7   :  { %v1507_v53 = vmul.f32 %v2057_v50, %v1461_v62  ;;  %v1363_v54 = vpop.f32.mrb[19].mxu1 }
 0x4e8   :  { %v1506_v3 = vmul.f32 %v1459_v49, %v1363_v54  ;;  %v1479_v54 = vpop.permute.xlu0 %1478 }
 0x4e9   :  { %v1529_v30 = vsel %vm49_vm0, %v1507_v53, 0.0 }
 0x4ea   :  { %v1530_v56 = vrot.slane %v1529_v30, 4  ;;  %v1522_v38 = vsel %vm49_vm0, %v1506_v3, 0.0  ;;  %v2060_v48 = vpop.f32.mrb[20].mxu1 }
 0x4eb   :  { %v1523_v21 = vrot.slane %v1522_v38, 4  ;;  %v1509_v1 = vmul.f32 %v2060_v48, %v1465_v26  ;;  %v1373_v42 = vpop.f32.mrb[21].mxu1 }
 0x4ec   :  { %v1531_v51 = vadd.f32 %v1530_v56, %v1529_v30  ;;  %v1508_v0 = vmul.f32 %v1463_v44, %v1373_v42 }
 0x4ed   :  { %v1524_v11 = vadd.f32 %v1523_v21, %v1522_v38  ;;  %v1543_v57 = vsel %vm49_vm0, %v1509_v1, 0.0 }
 0x4ee   :  { %v1532_v59 = vrot.slane %v1531_v51, 2  ;;  %v1544_v19 = vrot.slane %v1543_v57, 4  ;;  %v1536_v6 = vsel %vm49_vm0, %v1508_v0, 0.0  ;;  %v2063_v2 = vpop.f32.mrb[22].mxu1 }
 0x4ef   :  { %v1525_v8 = vrot.slane %v1524_v11, 2  ;;  %v1537_v46 = vrot.slane %v1536_v6, 4  ;;  %v1511_v22 = vmul.f32 %v2063_v2, %v1469_v47  ;;  %v1383_v61 = vpop.f32.mrb[23].mxu1 }
 0x4f0   :  { %v1533_v13 = vadd.f32 %v1532_v59, %v1531_v51  ;;  %v1545_v28 = vadd.f32 %v1544_v19, %v1543_v57  ;;  %v1510_v14 = vmul.f32 %v1467_v45, %v1383_v61 }
 0x4f1   :  { %v1526_v18 = vadd.f32 %v1525_v8, %v1524_v11  ;;  %v1538_v17 = vadd.f32 %v1537_v46, %v1536_v6  ;;  %v1557_v25 = vsel %vm49_vm0, %v1511_v22, 0.0 }
 0x4f2   :  { %v1534_v55 = vrot.slane %v1533_v13, 1  ;;  %v1546_v27 = vrot.slane %v1545_v28, 2  ;;  %v1558_v35 = vrot.slane %v1557_v25, 4  ;;  %v1550_v52 = vsel %vm49_vm0, %v1510_v14, 0.0 }
 0x4f3   :  { %v1527_v7 = vrot.slane %v1526_v18, 1  ;;  %v1539_v31 = vrot.slane %v1538_v17, 2  ;;  %v1551_v32 = vrot.slane %v1550_v52, 4  ;;  %v2066_v33 = vpop.f32.mrb[24].mxu1 }
 0x4f4   :  { %v1535_v36 = vadd.f32 %v1534_v55, %v1533_v13  ;;  %v1547_v63 = vadd.f32 %v1546_v27, %v1545_v28  ;;  %v1559_v37 = vadd.f32 %v1558_v35, %v1557_v25  ;;  %v1513_v39 = vmul.f32 %v2066_v33, %v1473_v20  ;;  %v1393_v41 = vpop.f32.mrb[25].mxu1 }
 0x4f5   :  { %v1528_v9 = vadd.f32 %v1527_v7, %v1526_v18  ;;  %v1540_v60 = vadd.f32 %v1539_v31, %v1538_v17  ;;  %v1552_v43 = vadd.f32 %v1551_v32, %v1550_v52  ;;  %v1512_v4 = vmul.f32 %v1471_v24, %v1393_v41  ;;  %v1485_v18 = vpop.permute.xlu0 %1484 }
 0x4f6   :  { %v1560_v58 = vrot.slane %v1559_v37, 2  ;;  %v1571_v40 = vsel %vm49_vm0, %v1513_v39, 0.0  ;;  %v1548_v62 = vrot.slane %v1547_v63, 1 }
 0x4f7   :  { %v1662_v10 = vsel %vm1661_vm3, %v1535_v36, %v1528_v9  ;;  %v1541_v12 = vrot.slane %v1540_v60, 1  ;;  %v1553_v16 = vrot.slane %v1552_v43, 2  ;;  %v1572_v23 = vrot.slane %v1571_v40, 4  ;;  %v2069_v29 = vpop.f32.mrb[26].mxu1 }
 0x4f8   :  { %v1561_v26 = vadd.f32 %v1560_v58, %v1559_v37  ;;  %v1564_v44 = vsel %vm49_vm0, %v1512_v4, 0.0  ;;  %v1515_v47 = vmul.f32 %v2069_v29, %v1477_v15  ;;  %v1403_v45 = vpop.f32.mrb[27].mxu1  ;;  %v1549_v51 = vadd.f32 %v1548_v62, %v1547_v63 }
 0x4f9   :  { %v1542_v49 = vadd.f32 %v1541_v12, %v1540_v60  ;;  %v1554_v50 = vadd.f32 %v1553_v16, %v1552_v43  ;;  %v1573_v24 = vadd.f32 %v1572_v23, %v1571_v40  ;;  %v1565_v53 = vrot.slane %v1564_v44, 4  ;;  %v1483_v43 = vpop.permute.xlu0 %1482 }
 0x4fa   :  { %v1562_v3 = vrot.slane %v1561_v26, 1  ;;  %v1585_v30 = vsel %vm49_vm0, %v1515_v47, 0.0  ;;  %v1514_v56 = vmul.f32 %v1475_v5, %v1403_v45 }
 0x4fb   :  { %v1664_v38 = vsel %vm1663_vm4, %v1542_v49, %v1662_v10  ;;  %v1555_v48 = vrot.slane %v1554_v50, 1  ;;  %v1574_v21 = vrot.slane %v1573_v24, 2  ;;  %v1566_v1 = vadd.f32 %v1565_v53, %v1564_v44  ;;  %v2072_v42 = vpop.f32.mrb[28].mxu1  ;;  %v1489_v49 = vpop.permute.xlu1 %1488 }
 0x4fc   :  { %v1586_v0 = vrot.slane %v1585_v30, 4  ;;  %v1578_v11 = vsel %vm49_vm0, %v1514_v56, 0.0  ;;  %v1517_v57 = vmul.f32 %v2072_v42, %v1481_v34  ;;  %v1413_v15 = vpop.f32.mrb[29].mxu1  ;;  %v1666_v22 = vsel %vm1665_vm5, %v1549_v51, %v1664_v38 }
 0x4fd   :  { %v1556_v59 = vadd.f32 %v1555_v48, %v1554_v50  ;;  %v1575_v19 = vadd.f32 %v1574_v21, %v1573_v24  ;;  %v1567_v6 = vrot.slane %v1566_v1, 2  ;;  %v1579_v2 = vrot.slane %v1578_v11, 4 }
 0x4fe   :  { %v1587_v8 = vadd.f32 %v1586_v0, %v1585_v30  ;;  %v1599_v5 = vsel %vm49_vm0, %v1517_v57, 0.0  ;;  %v1516_v46 = vmul.f32 %v1479_v54, %v1413_v15  ;;  %v1563_v61 = vadd.f32 %v1562_v3, %v1561_v26  ;;  %v1487_v54 = vpop.permute.xlu0 %1486 }
 0x4ff   :  { %v1568_v13 = vadd.f32 %v1567_v6, %v1566_v1  ;;  %v1580_v28 = vadd.f32 %v1579_v2, %v1578_v11  ;;  %v1600_v14 = vrot.slane %v1599_v5, 4  ;;  %v1576_v17 = vrot.slane %v1575_v19, 1 }
 0x500   :  { %v1588_v25 = vrot.slane %v1587_v8, 2  ;;  %v1592_v55 = vsel %vm49_vm0, %v1516_v46, 0.0  ;;  %v1668_v27 = vsel %vm1667_vm6, %v1556_v59, %v1666_v22 }
 0x501   :  { %v1569_v35 = vrot.slane %v1568_v13, 1  ;;  %v1581_v52 = vrot.slane %v1580_v28, 2  ;;  %v1601_v20 = vadd.f32 %v1600_v14, %v1599_v5  ;;  %v1593_v31 = vrot.slane %v1592_v55, 4 }
 0x502   :  { %v1589_v7 = vadd.f32 %v1588_v25, %v1587_v8  ;;  %v1670_v32 = vsel %vm1669_vm7, %v1563_v61, %v1668_v27  ;;  %v1577_v63 = vadd.f32 %v1576_v17, %v1575_v19 }
 0x503   :  { %v1570_v33 = vadd.f32 %v1569_v35, %v1568_v13  ;;  %v1582_v34 = vadd.f32 %v1581_v52, %v1580_v28  ;;  %v1602_v36 = vrot.slane %v1601_v20, 2  ;;  %v1594_v39 = vadd.f32 %v1593_v31, %v1592_v55 }
 0x504   :  { %v1590_v37 = vrot.slane %v1589_v7, 1 }
 0x505   :  { %v1583_v41 = vrot.slane %v1582_v34, 1  ;;  %v1603_v9 = vadd.f32 %v1602_v36, %v1601_v20  ;;  %v1672_v60 = vsel %vm1671_vm8, %v1570_v33, %v1670_v32  ;;  %v1595_v58 = vrot.slane %v1594_v39, 2  ;;  %v1849_v33 = vld [vmem:[%s2860_s6] ss:$0 sm:$0xff] }
 0x506   :  { %v1591_v4 = vadd.f32 %v1590_v37, %v1589_v7  ;;  %v1674_v40 = vsel %vm1673_vm9, %v1577_v63, %v1672_v60 }
 0x507   :  { %v1584_v10 = vadd.f32 %v1583_v41, %v1582_v34  ;;  %v2075_v12 = vpop.f32.mrb[30].mxu1  ;;  %2087 = vmatprep.mubr.msk.f32.mxu0 %vm49_vm0, %v1674_v40  ;;  %v1596_v16 = vadd.f32 %v1595_v58, %v1594_v39  ;;  %v1604_v26 = vrot.slane %v1603_v9, 1 }
 0x508   :  { %v1519_v23 = vmul.f32 %v2075_v12, %v1485_v18  ;;  %v1423_v29 = vpop.f32.mrb[31].mxu1 }
 0x509   :  { %v1675_v62 = vsel %vm1661_vm3, %v1591_v4, %v1584_v10  ;;  %v1518_v44 = vmul.f32 %v1483_v43, %v1423_v29  ;;  %v1597_v47 = vrot.slane %v1596_v16, 1  ;;  %v1605_v48 = vadd.f32 %v1604_v26, %v1603_v9 }
 0x50a   :  { %v1613_v45 = vsel %vm49_vm0, %v1519_v23, 0.0 }
 0x50b   :  { %v1614_v50 = vrot.slane %v1613_v45, 4  ;;  %v1606_v24 = vsel %vm49_vm0, %v1518_v44, 0.0  ;;  %v2078_v53 = vpop.f32.mrb[32].mxu1  ;;  %v1598_v3 = vadd.f32 %v1597_v47, %v1596_v16 }
 0x50c   :  { %v1607_v30 = vrot.slane %v1606_v24, 4  ;;  %v1521_v56 = vmul.f32 %v2078_v53, %v1489_v49  ;;  %v1433_v38 = vpop.f32.mrb[33].mxu1 }
 0x50d   :  { %v1615_v21 = vadd.f32 %v1614_v50, %v1613_v45  ;;  %v1520_v1 = vmul.f32 %v1487_v54, %v1433_v38  ;;  %v1676_v42 = vsel %vm1663_vm4, %v1598_v3, %v1675_v62 }
 0x50e   :  { %v1608_v51 = vadd.f32 %v1607_v30, %v1606_v24  ;;  %v1627_v0 = vsel %vm49_vm0, %v1521_v56, 0.0  ;;  %v1677_v57 = vsel %vm1665_vm5, %v1605_v48, %v1676_v42 }
 0x50f   :  { %v1616_v11 = vrot.slane %v1615_v21, 2  ;;  %v1628_v15 = vrot.slane %v1627_v0, 4  ;;  %v1620_v59 = vsel %vm49_vm0, %v1520_v1, 0.0 }
 0x510   :  { %v1609_v19 = vrot.slane %v1608_v51, 2  ;;  %v1621_v6 = vrot.slane %v1620_v59, 4 }
 0x511   :  { %v1617_v2 = vadd.f32 %v1616_v11, %v1615_v21  ;;  %v1629_v8 = vadd.f32 %v1628_v15, %v1627_v0 }
 0x512   :  { %v1610_v5 = vadd.f32 %v1609_v19, %v1608_v51  ;;  %v1622_v46 = vadd.f32 %v1621_v6, %v1620_v59 }
 0x513   :  { %v1618_v22 = vrot.slane %v1617_v2, 1  ;;  %v1630_v61 = vrot.slane %v1629_v8, 2 }
 0x514   :  { %v1611_v13 = vrot.slane %v1610_v5, 1  ;;  %v1623_v28 = vrot.slane %v1622_v46, 2 }
 0x515   :  { %v1631_v14 = vadd.f32 %v1630_v61, %v1629_v8  ;;  %v1619_v25 = vadd.f32 %v1618_v22, %v1617_v2 }
 0x516   :  { %v1612_v18 = vadd.f32 %v1611_v13, %v1610_v5  ;;  %v1624_v17 = vadd.f32 %v1623_v28, %v1622_v46 }
 0x517   :  { %v1632_v55 = vrot.slane %v1631_v14, 1 }
 0x518   :  { %v1678_v27 = vsel %vm1667_vm6, %v1612_v18, %v1677_v57  ;;  %v1625_v35 = vrot.slane %v1624_v17, 1 }
 0x519   :  { %v1679_v52 = vsel %vm1669_vm7, %v1619_v25, %v1678_v27  ;;  %v1633_v7 = vadd.f32 %v1632_v55, %v1631_v14 }
 0x51a   :  { %v1626_v20 = vadd.f32 %v1625_v35, %v1624_v17 }
 0x51c   :  { %v1680_v31 = vsel %vm1671_vm8, %v1626_v20, %v1679_v52 }
 0x51d   :  { %v1681_v32 = vsel %vm1673_vm9, %v1633_v7, %v1680_v31 }
 0x51e   :  { %2088 = vmatmul.mubr.msk.f32.vlgmr.msra.gmra.mrb[34].mxu0 %vm49_vm0, %v1681_v32 }
 0x5f1   :  { %v2089_v34 = vpop.f32.mrb[34].mxu0 }
 0x5f2   :  { %v1758_v36 = vadd.f32 %v2089_v34, %v1849_v33  ;;  %v1752_v63 = vpop.f32.mrb[35].mxu0 }
 0x5f3   :  { %v1753_v37 = vadd.f32 %v1849_v33, %v1752_v63 }
 0x5f4   :  { %1762 = vst.msk [vmem:[#allocation2 + $0x8] sm:$0xff] %vm49_vm0, %v1758_v36 }
 0x5f5   :  { %1761 = vst.msk [vmem:[#allocation2] sm:$0xff] %vm49_vm0, %v1753_v37 }
 0x5f6   :  { %2217 = shalt.err (!%p2214_p4)
}
 0x5f7   :  { %s2218_s9 = scalar_lea.hbm %s2867_s13, 256 }
 0x5f8   :  { %p2219_p5 = scmp.ne.s32.totalorder %s2867_s13, %s2218_s9  ;;  %p2222_p6 = scmp.lt.u32.totalorder %s2218_s9, %s2867_s13 }
 0x5fa   :  { %p2224_p7 = pnand %p2222_p6, %p2219_p5 }
 0x5fc   :  { %2227 = shalt.err (!%p2224_p7)
}
 0x5fd   :  { %s2232_s30 = smov 128   ;;  %s2233_s14 = smov 8  }
 0x5fe   :  { %1774 = dma.vmem_to_hbm [thread:$0]  %s1769_s25, 256, %s2867_s13, [#allocation3], %s2232_s30, %s2232_s30, %s2233_s14  }
 0x5ff   :  { %2228 = dma.done.wait [#allocation3], 256  }
 0x600   :  { %2229 = vsyncadd [#allocation3], 4294967040 }
 0x601   :  { %1778 = vsyncpa [#allocation3], 1 }

</bundles_post_ra>
